<compile_context>
chip_gen: v6e
topology: v6e:2x2x1
jax: 0.10.0
libtpu: 0.0.40
codegen_flags: <defaults>
</compile_context>

<pallas_src>
import jax
import jax.numpy as jnp
from jax import lax
from jax.experimental import pallas as pl
from jax.experimental.pallas import tpu as pltpu

# ----- model hyper-parameters (small, consistent with the module) -----
BB = 8             # per-grid-block batch (sublane-aligned)
NB = 2             # number of batch blocks = grid size ("parallel" -> v7x megacore)
B = NB * BB        # total sentences per call (batch amortization of the recurrence)
L = 8              # max_sent_len (sequence length)
D = 32             # word_dim (embedding dim)
H_RNN = 32         # rnn_hidden_dim (bidirectional total)
H = H_RNN // 2     # per-direction hidden size (16)
F1 = 32            # fc1_hidden_dim
T = 8              # targ_size
VOCAB = 50         # word_size

H2, H4, H6, H8 = 2 * H, 4 * H, 6 * H, 8 * H     # 32, 64, 96, 128


def mul_enti_attn_kernel(xb_ref,        # (L*BB, 2D) bf16; row s*BB+b = [x[s,b] | x[L-1-s,b]]
                         emask_ref,     # (L, BB, 1) f32; multi-hot entity mask (e1 + e2)
                         w_in_ref,      # (2D, 8H) bf16; fused/permuted input weights
                         b_in_ref,      # (1, 8H)  f32;  fused biases (b_ih + b_hh)
                         w_hh_ref,      # (2H, 8H) bf16; block-diag recurrent weights
                         wfc1_ref, bfc1_ref,   # (2H, F1), (1, F1)  f32
                         wfc2_ref, bfc2_ref,   # (F1, T),  (1, T)   f32
                         out_ref,       # (BB, T)  f32; log-probs
                         xg_ref,        # scratch (L*BB, 8H) f32: hoisted input projection
                         rnn_ref):      # scratch (L, BB, 2H) f32: rnn_out, time-major
    # ---- hoisted input-to-hidden projection: ONE bf16 128-lane matmul + bias ----
    xg_ref[...] = (jnp.dot(xb_ref[...], w_in_ref[...],
                           preferred_element_type=jnp.float32)
                   + b_in_ref[...])                                 # (L*BB, 8H) f32

    w_hh = w_hh_ref[...]          # (2H, 8H) bf16, loop-invariant MXU RHS

    # ---- fused bi-directional LSTM recurrence (8 serial steps, unrolled) ----
    def step(s, carry):
        h, c, e12f, e12b = carry                      # h,c: (BB,2H)=[fwd|bwd]; e12*: (BB,H)
        row = pl.multiple_of(s * BB, BB)              # 8-sublane-aligned tile-offset read
        gates = (xg_ref[pl.ds(row, BB), :]
                 + jnp.dot(h.astype(jnp.bfloat16), w_hh,
                           preferred_element_type=jnp.float32))     # (BB, 8H) f32
        # one EUP pass over all 128 gate lanes; g-gate columns were pre-scaled by 2
        sig = jax.nn.sigmoid(gates)
        i = sig[:, 0:H2]
        f = sig[:, H2:H4]
        o = sig[:, H4:H6]
        g = 2.0 * sig[:, H6:H8] - 1.0                 # == tanh(original g pre-activation)
        c = f * c + i * g                             # (BB, 2H) = [c_f | c_b]
        h = o * jnp.tanh(c)                           # (BB, 2H) = [h_f | h_b]
        # scatter halves to their time slots (fwd: t = s, bwd: t = L-1-s)
        rnn_ref[s, :, 0:H] = h[:, 0:H]
        rnn_ref[L - 1 - s, :, H:H2] = h[:, H:H2]
        # entity-hidden accumulation (e1 + e2) on idle VPU slots
        e12f = e12f + emask_ref[s] * h[:, 0:H]
        e12b = e12b + emask_ref[L - 1 - s] * h[:, H:H2]
        return (h, c, e12f, e12b)

    zeros2h = jnp.zeros((BB, H2), jnp.float32)
    zerosh = jnp.zeros((BB, H), jnp.float32)
    _, _, e12f, e12b = lax.fori_loop(0, L, step,
                                     (zeros2h, zeros2h, zerosh, zerosh),
                                     unroll=True)
    e12 = jnp.concatenate([e12f, e12b], axis=-1)      # (BB, 2H) = e1_hidden + e2_hidden

    rnn = rnn_ref[...]                                # (L, BB, 2H), time-major, f32

    # ---- fc1 projection of every time step: independent of the attention, so the
    #      MXU work overlaps the softmax VPU/EUP chain instead of trailing it ----
    P = jnp.dot(rnn.reshape(L * BB, H2), wfc1_ref[...],
                preferred_element_type=jnp.float32).reshape(L, BB, F1)

    # ---- attention: scores[b,t] = rnn_out[b,t] . (e1+e2)[b]; softmax over t ----
    scores = jnp.sum(rnn * e12[None, :, :], axis=-1, keepdims=True)   # (L, BB, 1)
    scores = scores - jnp.max(scores, axis=0, keepdims=True)
    e = jnp.exp(scores)
    prob = e * pl.reciprocal(jnp.sum(e, axis=0, keepdims=True), approx=True)  # (L, BB, 1)

    # ---- fc1 + ReLU (dropout layers are identity at inference);
    #      relu(sum_t prob*P + b) == relu((sum_t prob*rnn) @ wfc1 + b) ----
    fc1 = jnp.maximum(jnp.sum(prob * P, axis=0) + bfc1_ref[...], 0.0)  # (BB, F1)

    # ---- softmax_layer: Linear + log_softmax over targets ----
    # TODO(synk): ranking_layer output head (params['ranking_loss']=True branch)
    # is not implemented; the default softmax_layer path is used.
    logits = (jnp.dot(fc1, wfc2_ref[...], preferred_element_type=jnp.float32)
              + bfc2_ref[...])                        # (BB, T)
    z = logits - jnp.max(logits, axis=1, keepdims=True)
    out_ref[...] = z - jnp.log(jnp.sum(jnp.exp(z), axis=1, keepdims=True))


@jax.jit
def mul_enti_attn_dot_rnn(xb_blocks, e_mask3, w_in, b_in, w_hh,
                          wfc1, bfc1, wfc2, bfc2):
    return pl.pallas_call(
        mul_enti_attn_kernel,
        out_shape=jax.ShapeDtypeStruct((B, T), jnp.float32),
        grid=(NB,),
        in_specs=[
            pl.BlockSpec((None, L * BB, 2 * D), lambda i: (i, 0, 0)),  # xb chunk
            pl.BlockSpec((L, BB, 1), lambda i: (0, i, 0)),             # entity mask chunk
            pl.BlockSpec((2 * D, H8), lambda i: (0, 0)),               # w_in (replicated)
            pl.BlockSpec((1, H8), lambda i: (0, 0)),                   # b_in
            pl.BlockSpec((H2, H8), lambda i: (0, 0)),                  # w_hh
            pl.BlockSpec((H2, F1), lambda i: (0, 0)),                  # wfc1
            pl.BlockSpec((1, F1), lambda i: (0, 0)),                   # bfc1
            pl.BlockSpec((F1, T), lambda i: (0, 0)),                   # wfc2
            pl.BlockSpec((1, T), lambda i: (0, 0)),                    # bfc2
        ],
        out_specs=pl.BlockSpec((BB, T), lambda i: (i, 0)),
        scratch_shapes=[pltpu.VMEM((L * BB, H8), jnp.float32),
                        pltpu.VMEM((L, BB, H2), jnp.float32)],
        compiler_params=pltpu.CompilerParams(
            dimension_semantics=("parallel",)),       # v7x: split batch blocks across TCs
    )(xb_blocks, e_mask3, w_in, b_in, w_hh, wfc1, bfc1, wfc2, bfc2)


# ------------------------- parameter packing (glue) -------------------------
def _gate_split(w):
    """Split (in, 4H) columns, PyTorch LSTM gate order [i, f, g, o]."""
    return w[:, 0:H], w[:, H:2 * H], w[:, 2 * H:3 * H], w[:, 3 * H:4 * H]


def pack_lstm_weights(wih_f, whh_f, b_f, wih_b, whh_b, b_b):
    """Fused gate-column layout (8H = 128 lanes):
         [ i_f | i_b | f_f | f_b | o_f | o_b | g_f | g_b ]   (each H wide)
       w_in rows: x[s] (0:D) -> fwd gates, x[L-1-s] (D:2D) -> bwd gates.
       w_hh rows: h_f (0:H) -> fwd gates, h_b (H:2H) -> bwd gates.
       g-gate columns are scaled by 2 so the kernel can evaluate
       tanh(x) = 2*sigmoid(2x) - 1 with a single sigmoid over all 128 lanes.
       Matmul weights are returned in bf16 (MXU operands); bias stays f32."""
    i_f, f_f, g_f, o_f = _gate_split(wih_f)
    i_b, f_b, g_b, o_b = _gate_split(wih_b)
    hi_f, hf_f, hg_f, ho_f = _gate_split(whh_f)
    hi_b, hf_b, hg_b, ho_b = _gate_split(whh_b)
    bi_f, bf_f, bg_f, bo_f = _gate_split(b_f)
    bi_b, bf_b, bg_b, bo_b = _gate_split(b_b)
    # fold tanh -> sigmoid: pre-scale every g-gate contribution by 2
    g_f, g_b = 2.0 * g_f, 2.0 * g_b
    hg_f, hg_b = 2.0 * hg_f, 2.0 * hg_b
    bg_f, bg_b = 2.0 * bg_f, 2.0 * bg_b
    zd = jnp.zeros((D, H), jnp.float32)
    zh = jnp.zeros((H, H), jnp.float32)
    w_in = jnp.concatenate([
        jnp.concatenate([i_f, zd, f_f, zd, o_f, zd, g_f, zd], axis=1),
        jnp.concatenate([zd, i_b, zd, f_b, zd, o_b, zd, g_b], axis=1)], axis=0)
    w_hh = jnp.concatenate([
        jnp.concatenate([hi_f, zh, hf_f, zh, ho_f, zh, hg_f, zh], axis=1),
        jnp.concatenate([zh, hi_b, zh, hf_b, zh, ho_b, zh, hg_b], axis=1)], axis=0)
    b_in = jnp.concatenate([bi_f, bi_b, bf_f, bf_b, bo_f, bo_b, bg_f, bg_b], axis=1)
    return w_in.astype(jnp.bfloat16), w_hh.astype(jnp.bfloat16), b_in


def init_params(key):
    ks = jax.random.split(key, 16)
    u = lambda k, shape, r: jax.random.uniform(k, shape, jnp.float32, -r, r)
    r_lstm = 1.0 / jnp.sqrt(H)
    r_fc1 = 1.0 / jnp.sqrt(H_RNN)
    r_fc2 = 1.0 / jnp.sqrt(F1)
    p = dict(
        embed=jax.random.normal(ks[0], (VOCAB, D), jnp.float32) * 0.1,
        # per-direction LSTM weights, pre-transposed to (in, 4H), gate order i,f,g,o
        wih_f=u(ks[1], (D, 4 * H), r_lstm),
        whh_f=u(ks[2], (H, 4 * H), r_lstm),
        b_f=u(ks[3], (1, 4 * H), r_lstm) + u(ks[4], (1, 4 * H), r_lstm),   # b_ih + b_hh
        wih_b=u(ks[5], (D, 4 * H), r_lstm),
        whh_b=u(ks[6], (H, 4 * H), r_lstm),
        b_b=u(ks[7], (1, 4 * H), r_lstm) + u(ks[8], (1, 4 * H), r_lstm),
        # fc1: Linear(rnn_hidden_dim, fc1_hidden_dim), pre-transposed
        wfc1=u(ks[9], (H_RNN, F1), r_fc1),
        bfc1=u(ks[10], (1, F1), r_fc1),
        # softmax_layer fc: Linear(fc1_hidden_dim, targ_size), pre-transposed
        wfc2=u(ks[11], (F1, T), r_fc2),
        bfc2=u(ks[12], (1, T), r_fc2),
    )
    return p, ks[13]


if __name__ == "__main__":
    key = jax.random.PRNGKey(0)
    params, key = init_params(key)
    k_tok, k_e1, k_e2 = jax.random.split(key, 3)

    # token indices (B, L) -> embedding lookup in plain JAX (glue)
    tokens = jax.random.randint(k_tok, (B, L), 0, VOCAB)
    x = params["embed"][tokens]                               # (B, L, D)
    # dropout layers are identity at inference time
    x_tm = jnp.transpose(x, (1, 0, 2)).astype(jnp.float32)    # (L, B, D) time-major
    # step-aligned fused input: [x[s] | x[L-1-s]] per time step
    xb = jnp.concatenate([x_tm, x_tm[::-1]], axis=-1)         # (L, B, 2D)
    # chunk the batch into NB blocks of BB sentences; within a block,
    # row s*BB + b = [x[s, block*BB + b] | x[L-1-s, block*BB + b]]
    xb_blocks = (xb.reshape(L, NB, BB, 2 * D)
                   .transpose(1, 0, 2, 3)
                   .reshape(NB, L * BB, 2 * D)
                   .astype(jnp.bfloat16))                     # MXU operand in bf16

    # entity position indices (tensor_feats[1] / tensor_feats[2]) -> multi-hot
    # masks; batch_entity_hidden(..., cat_entity='sum') == mask-weighted sum.
    e1_idx = jax.random.randint(k_e1, (B, 2), 0, L)           # entity-1 positions per batch
    e2_idx = jax.random.randint(k_e2, (B, 1), 0, L)           # entity-2 positions per batch
    e1_mask = jax.nn.one_hot(e1_idx, L, dtype=jnp.float32).sum(axis=1)   # (B, L)
    e2_mask = jax.nn.one_hot(e2_idx, L, dtype=jnp.float32).sum(axis=1)   # (B, L)
    e_mask3 = (e1_mask + e2_mask).T[:, :, None]               # (L, B, 1), time-major

    w_in, w_hh, b_in = pack_lstm_weights(
        params["wih_f"], params["whh_f"], params["b_f"],
        params["wih_b"], params["whh_b"], params["b_b"])

    out = mul_enti_attn_dot_rnn(xb_blocks, e_mask3, w_in, b_in, w_hh,
                                params["wfc1"], params["bfc1"],
                                params["wfc2"], params["bfc2"])
    out = jax.block_until_ready(out)
    assert out.shape == (B, T)
    assert bool(jnp.all(jnp.isfinite(out)))
    # rows of log_softmax should exponentiate-and-sum to ~1
    assert bool(jnp.allclose(jnp.sum(jnp.exp(out), axis=1), 1.0, atol=1e-4))
    print("KERNEL_OK")
</pallas_src>

<mosaic_0001>
module attributes {stable_mosaic.version = 11 : i64} {
  func.func @mul_enti_attn_kernel(%arg0: i32, %arg1: memref<1x64x64xbf16, #tpu.memory_space<vmem>>, %arg2: memref<8x8x1xf32, #tpu.memory_space<vmem>>, %arg3: memref<64x128xbf16, #tpu.memory_space<vmem>>, %arg4: memref<1x128xf32, #tpu.memory_space<vmem>>, %arg5: memref<32x128xbf16, #tpu.memory_space<vmem>>, %arg6: memref<32x32xf32, #tpu.memory_space<vmem>>, %arg7: memref<1x32xf32, #tpu.memory_space<vmem>>, %arg8: memref<32x8xf32, #tpu.memory_space<vmem>>, %arg9: memref<1x8xf32, #tpu.memory_space<vmem>>, %arg10: memref<8x8xf32, #tpu.memory_space<vmem>>, %arg11: memref<64x128xf32, #tpu.memory_space<vmem>>, %arg12: memref<8x8x32xf32, #tpu.memory_space<vmem>>) attributes {dimension_semantics = [#tpu.dimension_semantics<parallel>], iteration_bounds = array<i64: 2>, scalar_prefetch = 0 : i64, scratch_operands = 2 : i64, tpu.core_type = #tpu.core_type<tc>, window_params = [{transform_indices = @transform_0, window_bounds = array<i64: 1, 64, 64>}, {transform_indices = @transform_1, window_bounds = array<i64: 8, 8, 1>}, {pipeline_mode = #tpu.pipeline_mode<synchronous>, transform_indices = @transform_2, window_bounds = array<i64: 64, 128>}, {pipeline_mode = #tpu.pipeline_mode<synchronous>, transform_indices = @transform_3, window_bounds = array<i64: 1, 128>}, {pipeline_mode = #tpu.pipeline_mode<synchronous>, transform_indices = @transform_4, window_bounds = array<i64: 32, 128>}, {pipeline_mode = #tpu.pipeline_mode<synchronous>, transform_indices = @transform_5, window_bounds = array<i64: 32, 32>}, {pipeline_mode = #tpu.pipeline_mode<synchronous>, transform_indices = @transform_6, window_bounds = array<i64: 1, 32>}, {pipeline_mode = #tpu.pipeline_mode<synchronous>, transform_indices = @transform_7, window_bounds = array<i64: 32, 8>}, {pipeline_mode = #tpu.pipeline_mode<synchronous>, transform_indices = @transform_8, window_bounds = array<i64: 1, 8>}, {transform_indices = @transform_9, window_bounds = array<i64: 8, 8>}]} {
    %c0 = arith.constant 0 : index
    %c0_0 = arith.constant 0 : index
    %c0_1 = arith.constant 0 : index
    %0 = vector.load %arg1[%c0, %c0_0, %c0_1] : memref<1x64x64xbf16, #tpu.memory_space<vmem>>, vector<1x64x64xbf16>
    %1 = vector.shape_cast %0 : vector<1x64x64xbf16> to vector<64x64xbf16>
    %c0_2 = arith.constant 0 : index
    %c0_3 = arith.constant 0 : index
    %2 = vector.load %arg3[%c0_2, %c0_3] : memref<64x128xbf16, #tpu.memory_space<vmem>>, vector<64x128xbf16>
    %cst = arith.constant dense<0.000000e+00> : vector<64x128xf32>
    %3 = tpu.matmul %1, %2, %cst {dimension_numbers = #tpu.dot_dimension_numbers<[1], [0], [0], [1], [0, 0, 1, 1], [], []>} : vector<64x64xbf16>, vector<64x128xbf16>, vector<64x128xf32> -> vector<64x128xf32>
    %c0_4 = arith.constant 0 : index
    %c0_5 = arith.constant 0 : index
    %4 = vector.load %arg4[%c0_4, %c0_5] : memref<1x128xf32, #tpu.memory_space<vmem>>, vector<1x128xf32>
    %5 = vector.broadcast %4 : vector<1x128xf32> to vector<64x128xf32>
    %6 = arith.addf %3, %5 : vector<64x128xf32>
    %c0_6 = arith.constant 0 : index
    %c0_7 = arith.constant 0 : index
    %7 = vector.load %arg11[%c0_6, %c0_7] : memref<64x128xf32, #tpu.memory_space<vmem>>, vector<64x128xf32>
    tpu.vector_store %arg11[%c0_6, %c0_7], %6 {strides = array<i32>} : memref<64x128xf32, #tpu.memory_space<vmem>>, vector<64x128xf32>,
    %c0_8 = arith.constant 0 : index
    %c0_9 = arith.constant 0 : index
    %8 = vector.load %arg5[%c0_8, %c0_9] : memref<32x128xbf16, #tpu.memory_space<vmem>>, vector<32x128xbf16>
    %cst_10 = arith.constant 0.000000e+00 : f32
    %9 = vector.broadcast %cst_10 : f32 to vector<8x32xf32>
    %cst_11 = arith.constant 0.000000e+00 : f32
    %10 = vector.broadcast %cst_11 : f32 to vector<8x16xf32>
    %c0_i32 = arith.constant 0 : i32
    %c8_i32 = arith.constant 8 : i32
    %11 = arith.muli %c0_i32, %c8_i32 : i32
    %12 = tpu.assume_multiple %11, 8 : i32
    %13 = arith.index_cast %12 : i32 to index
    %c0_12 = arith.constant 0 : index
    %14 = vector.load %arg11[%13, %c0_12] : memref<64x128xf32, #tpu.memory_space<vmem>>, vector<8x128xf32>
    %15 = arith.truncf %9 : vector<8x32xf32> to vector<8x32xbf16>
    %cst_13 = arith.constant dense<0.000000e+00> : vector<8x128xf32>
    %16 = tpu.matmul %15, %8, %cst_13 {dimension_numbers = #tpu.dot_dimension_numbers<[1], [0], [0], [1], [0, 0, 1, 1], [], []>} : vector<8x32xbf16>, vector<32x128xbf16>, vector<8x128xf32> -> vector<8x128xf32>
    %17 = arith.addf %14, %16 : vector<8x128xf32>
    %18 = arith.negf %17 : vector<8x128xf32>
    %19 = math.exp %18 : vector<8x128xf32>
    %cst_14 = arith.constant 1.000000e+00 : f32
    %20 = vector.broadcast %cst_14 : f32 to vector<8x128xf32>
    %21 = arith.addf %20, %19 : vector<8x128xf32>
    %22 = arith.divf %20, %21 : vector<8x128xf32>
    %23 = vector.extract_strided_slice %22 {offsets = [0, 0], sizes = [8, 32], strides = [1, 1]} : vector<8x128xf32> to vector<8x32xf32>
    %24 = vector.extract_strided_slice %22 {offsets = [0, 32], sizes = [8, 32], strides = [1, 1]} : vector<8x128xf32> to vector<8x32xf32>
    %25 = vector.extract_strided_slice %22 {offsets = [0, 64], sizes = [8, 32], strides = [1, 1]} : vector<8x128xf32> to vector<8x32xf32>
    %26 = vector.extract_strided_slice %22 {offsets = [0, 96], sizes = [8, 32], strides = [1, 1]} : vector<8x128xf32> to vector<8x32xf32>
    %cst_15 = arith.constant 2.000000e+00 : f32
    %27 = vector.broadcast %cst_15 : f32 to vector<8x32xf32>
    %28 = arith.mulf %27, %26 : vector<8x32xf32>
    %cst_16 = arith.constant 1.000000e+00 : f32
    %29 = vector.broadcast %cst_16 : f32 to vector<8x32xf32>
    %30 = arith.subf %28, %29 : vector<8x32xf32>
    %31 = arith.mulf %24, %9 : vector<8x32xf32>
    %32 = arith.mulf %23, %30 : vector<8x32xf32>
    %33 = arith.addf %31, %32 : vector<8x32xf32>
    %34 = math.tanh %33 : vector<8x32xf32>
    %35 = arith.mulf %25, %34 : vector<8x32xf32>
    %36 = vector.extract_strided_slice %35 {offsets = [0, 0], sizes = [8, 16], strides = [1, 1]} : vector<8x32xf32> to vector<8x16xf32>
    %37 = arith.index_cast %c0_i32 : i32 to index
    %c0_17 = arith.constant 0 : index
    %c0_18 = arith.constant 0 : index
    %38 = vector.load %arg12[%37, %c0_17, %c0_18] : memref<8x8x32xf32, #tpu.memory_space<vmem>>, vector<1x8x16xf32>
    %39 = vector.shape_cast %38 : vector<1x8x16xf32> to vector<8x16xf32>
    %40 = vector.shape_cast %36 : vector<8x16xf32> to vector<1x8x16xf32>
    tpu.vector_store %arg12[%37, %c0_17, %c0_18], %40 {strides = array<i32>} : memref<8x8x32xf32, #tpu.memory_space<vmem>>, vector<1x8x16xf32>,
    %41 = vector.extract_strided_slice %35 {offsets = [0, 16], sizes = [8, 16], strides = [1, 1]} : vector<8x32xf32> to vector<8x16xf32>
    %c7_i32 = arith.constant 7 : i32
    %42 = arith.subi %c7_i32, %c0_i32 : i32
    %43 = arith.index_cast %42 : i32 to index
    %c0_19 = arith.constant 0 : index
    %c16 = arith.constant 16 : index
    %44 = vector.load %arg12[%43, %c0_19, %c16] : memref<8x8x32xf32, #tpu.memory_space<vmem>>, vector<1x8x16xf32>
    %45 = vector.shape_cast %44 : vector<1x8x16xf32> to vector<8x16xf32>
    %46 = vector.shape_cast %41 : vector<8x16xf32> to vector<1x8x16xf32>
    tpu.vector_store %arg12[%43, %c0_19, %c16], %46 {strides = array<i32>} : memref<8x8x32xf32, #tpu.memory_space<vmem>>, vector<1x8x16xf32>,
    %47 = arith.index_cast %c0_i32 : i32 to index
    %c0_20 = arith.constant 0 : index
    %c0_21 = arith.constant 0 : index
    %48 = vector.load %arg2[%47, %c0_20, %c0_21] : memref<8x8x1xf32, #tpu.memory_space<vmem>>, vector<1x8x1xf32>
    %49 = vector.shape_cast %48 : vector<1x8x1xf32> to vector<8x1xf32>
    %50 = vector.extract_strided_slice %35 {offsets = [0, 0], sizes = [8, 16], strides = [1, 1]} : vector<8x32xf32> to vector<8x16xf32>
    %51 = vector.broadcast %49 : vector<8x1xf32> to vector<8x16xf32>
    %52 = arith.mulf %51, %50 : vector<8x16xf32>
    %53 = arith.addf %10, %52 : vector<8x16xf32>
    %c7_i32_22 = arith.constant 7 : i32
    %54 = arith.subi %c7_i32_22, %c0_i32 : i32
    %55 = arith.index_cast %54 : i32 to index
    %c0_23 = arith.constant 0 : index
    %c0_24 = arith.constant 0 : index
    %56 = vector.load %arg2[%55, %c0_23, %c0_24] : memref<8x8x1xf32, #tpu.memory_space<vmem>>, vector<1x8x1xf32>
    %57 = vector.shape_cast %56 : vector<1x8x1xf32> to vector<8x1xf32>
    %58 = vector.extract_strided_slice %35 {offsets = [0, 16], sizes = [8, 16], strides = [1, 1]} : vector<8x32xf32> to vector<8x16xf32>
    %59 = vector.broadcast %57 : vector<8x1xf32> to vector<8x16xf32>
    %60 = arith.mulf %59, %58 : vector<8x16xf32>
    %61 = arith.addf %10, %60 : vector<8x16xf32>
    %c1_i32 = arith.constant 1 : i32
    %c8_i32_25 = arith.constant 8 : i32
    %62 = arith.muli %c1_i32, %c8_i32_25 : i32
    %63 = tpu.assume_multiple %62, 8 : i32
    %64 = arith.index_cast %63 : i32 to index
    %c0_26 = arith.constant 0 : index
    %65 = vector.load %arg11[%64, %c0_26] : memref<64x128xf32, #tpu.memory_space<vmem>>, vector<8x128xf32>
    %66 = arith.truncf %35 : vector<8x32xf32> to vector<8x32xbf16>
    %cst_27 = arith.constant dense<0.000000e+00> : vector<8x128xf32>
    %67 = tpu.matmul %66, %8, %cst_27 {dimension_numbers = #tpu.dot_dimension_numbers<[1], [0], [0], [1], [0, 0, 1, 1], [], []>} : vector<8x32xbf16>, vector<32x128xbf16>, vector<8x128xf32> -> vector<8x128xf32>
    %68 = arith.addf %65, %67 : vector<8x128xf32>
    %69 = arith.negf %68 : vector<8x128xf32>
    %70 = math.exp %69 : vector<8x128xf32>
    %cst_28 = arith.constant 1.000000e+00 : f32
    %71 = vector.broadcast %cst_28 : f32 to vector<8x128xf32>
    %72 = arith.addf %71, %70 : vector<8x128xf32>
    %73 = arith.divf %71, %72 : vector<8x128xf32>
    %74 = vector.extract_strided_slice %73 {offsets = [0, 0], sizes = [8, 32], strides = [1, 1]} : vector<8x128xf32> to vector<8x32xf32>
    %75 = vector.extract_strided_slice %73 {offsets = [0, 32], sizes = [8, 32], strides = [1, 1]} : vector<8x128xf32> to vector<8x32xf32>
    %76 = vector.extract_strided_slice %73 {offsets = [0, 64], sizes = [8, 32], strides = [1, 1]} : vector<8x128xf32> to vector<8x32xf32>
    %77 = vector.extract_strided_slice %73 {offsets = [0, 96], sizes = [8, 32], strides = [1, 1]} : vector<8x128xf32> to vector<8x32xf32>
    %cst_29 = arith.constant 2.000000e+00 : f32
    %78 = vector.broadcast %cst_29 : f32 to vector<8x32xf32>
    %79 = arith.mulf %78, %77 : vector<8x32xf32>
    %cst_30 = arith.constant 1.000000e+00 : f32
    %80 = vector.broadcast %cst_30 : f32 to vector<8x32xf32>
    %81 = arith.subf %79, %80 : vector<8x32xf32>
    %82 = arith.mulf %75, %33 : vector<8x32xf32>
    %83 = arith.mulf %74, %81 : vector<8x32xf32>
    %84 = arith.addf %82, %83 : vector<8x32xf32>
    %85 = math.tanh %84 : vector<8x32xf32>
    %86 = arith.mulf %76, %85 : vector<8x32xf32>
    %87 = vector.extract_strided_slice %86 {offsets = [0, 0], sizes = [8, 16], strides = [1, 1]} : vector<8x32xf32> to vector<8x16xf32>
    %88 = arith.index_cast %c1_i32 : i32 to index
    %c0_31 = arith.constant 0 : index
    %c0_32 = arith.constant 0 : index
    %89 = vector.load %arg12[%88, %c0_31, %c0_32] : memref<8x8x32xf32, #tpu.memory_space<vmem>>, vector<1x8x16xf32>
    %90 = vector.shape_cast %89 : vector<1x8x16xf32> to vector<8x16xf32>
    %91 = vector.shape_cast %87 : vector<8x16xf32> to vector<1x8x16xf32>
    tpu.vector_store %arg12[%88, %c0_31, %c0_32], %91 {strides = array<i32>} : memref<8x8x32xf32, #tpu.memory_space<vmem>>, vector<1x8x16xf32>,
    %92 = vector.extract_strided_slice %86 {offsets = [0, 16], sizes = [8, 16], strides = [1, 1]} : vector<8x32xf32> to vector<8x16xf32>
    %c7_i32_33 = arith.constant 7 : i32
    %93 = arith.subi %c7_i32_33, %c1_i32 : i32
    %94 = arith.index_cast %93 : i32 to index
    %c0_34 = arith.constant 0 : index
    %c16_35 = arith.constant 16 : index
    %95 = vector.load %arg12[%94, %c0_34, %c16_35] : memref<8x8x32xf32, #tpu.memory_space<vmem>>, vector<1x8x16xf32>
    %96 = vector.shape_cast %95 : vector<1x8x16xf32> to vector<8x16xf32>
    %97 = vector.shape_cast %92 : vector<8x16xf32> to vector<1x8x16xf32>
    tpu.vector_store %arg12[%94, %c0_34, %c16_35], %97 {strides = array<i32>} : memref<8x8x32xf32, #tpu.memory_space<vmem>>, vector<1x8x16xf32>,
    %98 = arith.index_cast %c1_i32 : i32 to index
    %c0_36 = arith.constant 0 : index
    %c0_37 = arith.constant 0 : index
    %99 = vector.load %arg2[%98, %c0_36, %c0_37] : memref<8x8x1xf32, #tpu.memory_space<vmem>>, vector<1x8x1xf32>
    %100 = vector.shape_cast %99 : vector<1x8x1xf32> to vector<8x1xf32>
    %101 = vector.extract_strided_slice %86 {offsets = [0, 0], sizes = [8, 16], strides = [1, 1]} : vector<8x32xf32> to vector<8x16xf32>
    %102 = vector.broadcast %100 : vector<8x1xf32> to vector<8x16xf32>
    %103 = arith.mulf %102, %101 : vector<8x16xf32>
    %104 = arith.addf %53, %103 : vector<8x16xf32>
    %c7_i32_38 = arith.constant 7 : i32
    %105 = arith.subi %c7_i32_38, %c1_i32 : i32
    %106 = arith.index_cast %105 : i32 to index
    %c0_39 = arith.constant 0 : index
    %c0_40 = arith.constant 0 : index
    %107 = vector.load %arg2[%106, %c0_39, %c0_40] : memref<8x8x1xf32, #tpu.memory_space<vmem>>, vector<1x8x1xf32>
    %108 = vector.shape_cast %107 : vector<1x8x1xf32> to vector<8x1xf32>
    %109 = vector.extract_strided_slice %86 {offsets = [0, 16], sizes = [8, 16], strides = [1, 1]} : vector<8x32xf32> to vector<8x16xf32>
    %110 = vector.broadcast %108 : vector<8x1xf32> to vector<8x16xf32>
    %111 = arith.mulf %110, %109 : vector<8x16xf32>
    %112 = arith.addf %61, %111 : vector<8x16xf32>
    %c2_i32 = arith.constant 2 : i32
    %c8_i32_41 = arith.constant 8 : i32
    %113 = arith.muli %c2_i32, %c8_i32_41 : i32
    %114 = tpu.assume_multiple %113, 8 : i32
    %115 = arith.index_cast %114 : i32 to index
    %c0_42 = arith.constant 0 : index
    %116 = vector.load %arg11[%115, %c0_42] : memref<64x128xf32, #tpu.memory_space<vmem>>, vector<8x128xf32>
    %117 = arith.truncf %86 : vector<8x32xf32> to vector<8x32xbf16>
    %cst_43 = arith.constant dense<0.000000e+00> : vector<8x128xf32>
    %118 = tpu.matmul %117, %8, %cst_43 {dimension_numbers = #tpu.dot_dimension_numbers<[1], [0], [0], [1], [0, 0, 1, 1], [], []>} : vector<8x32xbf16>, vector<32x128xbf16>, vector<8x128xf32> -> vector<8x128xf32>
    %119 = arith.addf %116, %118 : vector<8x128xf32>
    %120 = arith.negf %119 : vector<8x128xf32>
    %121 = math.exp %120 : vector<8x128xf32>
    %cst_44 = arith.constant 1.000000e+00 : f32
    %122 = vector.broadcast %cst_44 : f32 to vector<8x128xf32>
    %123 = arith.addf %122, %121 : vector<8x128xf32>
    %124 = arith.divf %122, %123 : vector<8x128xf32>
    %125 = vector.extract_strided_slice %124 {offsets = [0, 0], sizes = [8, 32], strides = [1, 1]} : vector<8x128xf32> to vector<8x32xf32>
    %126 = vector.extract_strided_slice %124 {offsets = [0, 32], sizes = [8, 32], strides = [1, 1]} : vector<8x128xf32> to vector<8x32xf32>
    %127 = vector.extract_strided_slice %124 {offsets = [0, 64], sizes = [8, 32], strides = [1, 1]} : vector<8x128xf32> to vector<8x32xf32>
    %128 = vector.extract_strided_slice %124 {offsets = [0, 96], sizes = [8, 32], strides = [1, 1]} : vector<8x128xf32> to vector<8x32xf32>
    %cst_45 = arith.constant 2.000000e+00 : f32
    %129 = vector.broadcast %cst_45 : f32 to vector<8x32xf32>
    %130 = arith.mulf %129, %128 : vector<8x32xf32>
    %cst_46 = arith.constant 1.000000e+00 : f32
    %131 = vector.broadcast %cst_46 : f32 to vector<8x32xf32>
    %132 = arith.subf %130, %131 : vector<8x32xf32>
    %133 = arith.mulf %126, %84 : vector<8x32xf32>
    %134 = arith.mulf %125, %132 : vector<8x32xf32>
    %135 = arith.addf %133, %134 : vector<8x32xf32>
    %136 = math.tanh %135 : vector<8x32xf32>
    %137 = arith.mulf %127, %136 : vector<8x32xf32>
    %138 = vector.extract_strided_slice %137 {offsets = [0, 0], sizes = [8, 16], strides = [1, 1]} : vector<8x32xf32> to vector<8x16xf32>
    %139 = arith.index_cast %c2_i32 : i32 to index
    %c0_47 = arith.constant 0 : index
    %c0_48 = arith.constant 0 : index
    %140 = vector.load %arg12[%139, %c0_47, %c0_48] : memref<8x8x32xf32, #tpu.memory_space<vmem>>, vector<1x8x16xf32>
    %141 = vector.shape_cast %140 : vector<1x8x16xf32> to vector<8x16xf32>
    %142 = vector.shape_cast %138 : vector<8x16xf32> to vector<1x8x16xf32>
    tpu.vector_store %arg12[%139, %c0_47, %c0_48], %142 {strides = array<i32>} : memref<8x8x32xf32, #tpu.memory_space<vmem>>, vector<1x8x16xf32>,
    %143 = vector.extract_strided_slice %137 {offsets = [0, 16], sizes = [8, 16], strides = [1, 1]} : vector<8x32xf32> to vector<8x16xf32>
    %c7_i32_49 = arith.constant 7 : i32
    %144 = arith.subi %c7_i32_49, %c2_i32 : i32
    %145 = arith.index_cast %144 : i32 to index
    %c0_50 = arith.constant 0 : index
    %c16_51 = arith.constant 16 : index
    %146 = vector.load %arg12[%145, %c0_50, %c16_51] : memref<8x8x32xf32, #tpu.memory_space<vmem>>, vector<1x8x16xf32>
    %147 = vector.shape_cast %146 : vector<1x8x16xf32> to vector<8x16xf32>
    %148 = vector.shape_cast %143 : vector<8x16xf32> to vector<1x8x16xf32>
    tpu.vector_store %arg12[%145, %c0_50, %c16_51], %148 {strides = array<i32>} : memref<8x8x32xf32, #tpu.memory_space<vmem>>, vector<1x8x16xf32>,
    %149 = arith.index_cast %c2_i32 : i32 to index
    %c0_52 = arith.constant 0 : index
    %c0_53 = arith.constant 0 : index
    %150 = vector.load %arg2[%149, %c0_52, %c0_53] : memref<8x8x1xf32, #tpu.memory_space<vmem>>, vector<1x8x1xf32>
    %151 = vector.shape_cast %150 : vector<1x8x1xf32> to vector<8x1xf32>
    %152 = vector.extract_strided_slice %137 {offsets = [0, 0], sizes = [8, 16], strides = [1, 1]} : vector<8x32xf32> to vector<8x16xf32>
    %153 = vector.broadcast %151 : vector<8x1xf32> to vector<8x16xf32>
    %154 = arith.mulf %153, %152 : vector<8x16xf32>
    %155 = arith.addf %104, %154 : vector<8x16xf32>
    %c7_i32_54 = arith.constant 7 : i32
    %156 = arith.subi %c7_i32_54, %c2_i32 : i32
    %157 = arith.index_cast %156 : i32 to index
    %c0_55 = arith.constant 0 : index
    %c0_56 = arith.constant 0 : index
    %158 = vector.load %arg2[%157, %c0_55, %c0_56] : memref<8x8x1xf32, #tpu.memory_space<vmem>>, vector<1x8x1xf32>
    %159 = vector.shape_cast %158 : vector<1x8x1xf32> to vector<8x1xf32>
    %160 = vector.extract_strided_slice %137 {offsets = [0, 16], sizes = [8, 16], strides = [1, 1]} : vector<8x32xf32> to vector<8x16xf32>
    %161 = vector.broadcast %159 : vector<8x1xf32> to vector<8x16xf32>
    %162 = arith.mulf %161, %160 : vector<8x16xf32>
    %163 = arith.addf %112, %162 : vector<8x16xf32>
    %c3_i32 = arith.constant 3 : i32
    %c8_i32_57 = arith.constant 8 : i32
    %164 = arith.muli %c3_i32, %c8_i32_57 : i32
    %165 = tpu.assume_multiple %164, 8 : i32
    %166 = arith.index_cast %165 : i32 to index
    %c0_58 = arith.constant 0 : index
    %167 = vector.load %arg11[%166, %c0_58] : memref<64x128xf32, #tpu.memory_space<vmem>>, vector<8x128xf32>
    %168 = arith.truncf %137 : vector<8x32xf32> to vector<8x32xbf16>
    %cst_59 = arith.constant dense<0.000000e+00> : vector<8x128xf32>
    %169 = tpu.matmul %168, %8, %cst_59 {dimension_numbers = #tpu.dot_dimension_numbers<[1], [0], [0], [1], [0, 0, 1, 1], [], []>} : vector<8x32xbf16>, vector<32x128xbf16>, vector<8x128xf32> -> vector<8x128xf32>
    %170 = arith.addf %167, %169 : vector<8x128xf32>
    %171 = arith.negf %170 : vector<8x128xf32>
    %172 = math.exp %171 : vector<8x128xf32>
    %cst_60 = arith.constant 1.000000e+00 : f32
    %173 = vector.broadcast %cst_60 : f32 to vector<8x128xf32>
    %174 = arith.addf %173, %172 : vector<8x128xf32>
    %175 = arith.divf %173, %174 : vector<8x128xf32>
    %176 = vector.extract_strided_slice %175 {offsets = [0, 0], sizes = [8, 32], strides = [1, 1]} : vector<8x128xf32> to vector<8x32xf32>
    %177 = vector.extract_strided_slice %175 {offsets = [0, 32], sizes = [8, 32], strides = [1, 1]} : vector<8x128xf32> to vector<8x32xf32>
    %178 = vector.extract_strided_slice %175 {offsets = [0, 64], sizes = [8, 32], strides = [1, 1]} : vector<8x128xf32> to vector<8x32xf32>
    %179 = vector.extract_strided_slice %175 {offsets = [0, 96], sizes = [8, 32], strides = [1, 1]} : vector<8x128xf32> to vector<8x32xf32>
    %cst_61 = arith.constant 2.000000e+00 : f32
    %180 = vector.broadcast %cst_61 : f32 to vector<8x32xf32>
    %181 = arith.mulf %180, %179 : vector<8x32xf32>
    %cst_62 = arith.constant 1.000000e+00 : f32
    %182 = vector.broadcast %cst_62 : f32 to vector<8x32xf32>
    %183 = arith.subf %181, %182 : vector<8x32xf32>
    %184 = arith.mulf %177, %135 : vector<8x32xf32>
    %185 = arith.mulf %176, %183 : vector<8x32xf32>
    %186 = arith.addf %184, %185 : vector<8x32xf32>
    %187 = math.tanh %186 : vector<8x32xf32>
    %188 = arith.mulf %178, %187 : vector<8x32xf32>
    %189 = vector.extract_strided_slice %188 {offsets = [0, 0], sizes = [8, 16], strides = [1, 1]} : vector<8x32xf32> to vector<8x16xf32>
    %190 = arith.index_cast %c3_i32 : i32 to index
    %c0_63 = arith.constant 0 : index
    %c0_64 = arith.constant 0 : index
    %191 = vector.load %arg12[%190, %c0_63, %c0_64] : memref<8x8x32xf32, #tpu.memory_space<vmem>>, vector<1x8x16xf32>
    %192 = vector.shape_cast %191 : vector<1x8x16xf32> to vector<8x16xf32>
    %193 = vector.shape_cast %189 : vector<8x16xf32> to vector<1x8x16xf32>
    tpu.vector_store %arg12[%190, %c0_63, %c0_64], %193 {strides = array<i32>} : memref<8x8x32xf32, #tpu.memory_space<vmem>>, vector<1x8x16xf32>,
    %194 = vector.extract_strided_slice %188 {offsets = [0, 16], sizes = [8, 16], strides = [1, 1]} : vector<8x32xf32> to vector<8x16xf32>
    %c7_i32_65 = arith.constant 7 : i32
    %195 = arith.subi %c7_i32_65, %c3_i32 : i32
    %196 = arith.index_cast %195 : i32 to index
    %c0_66 = arith.constant 0 : index
    %c16_67 = arith.constant 16 : index
    %197 = vector.load %arg12[%196, %c0_66, %c16_67] : memref<8x8x32xf32, #tpu.memory_space<vmem>>, vector<1x8x16xf32>
    %198 = vector.shape_cast %197 : vector<1x8x16xf32> to vector<8x16xf32>
    %199 = vector.shape_cast %194 : vector<8x16xf32> to vector<1x8x16xf32>
    tpu.vector_store %arg12[%196, %c0_66, %c16_67], %199 {strides = array<i32>} : memref<8x8x32xf32, #tpu.memory_space<vmem>>, vector<1x8x16xf32>,
    %200 = arith.index_cast %c3_i32 : i32 to index
    %c0_68 = arith.constant 0 : index
    %c0_69 = arith.constant 0 : index
    %201 = vector.load %arg2[%200, %c0_68, %c0_69] : memref<8x8x1xf32, #tpu.memory_space<vmem>>, vector<1x8x1xf32>
    %202 = vector.shape_cast %201 : vector<1x8x1xf32> to vector<8x1xf32>
    %203 = vector.extract_strided_slice %188 {offsets = [0, 0], sizes = [8, 16], strides = [1, 1]} : vector<8x32xf32> to vector<8x16xf32>
    %204 = vector.broadcast %202 : vector<8x1xf32> to vector<8x16xf32>
    %205 = arith.mulf %204, %203 : vector<8x16xf32>
    %206 = arith.addf %155, %205 : vector<8x16xf32>
    %c7_i32_70 = arith.constant 7 : i32
    %207 = arith.subi %c7_i32_70, %c3_i32 : i32
    %208 = arith.index_cast %207 : i32 to index
    %c0_71 = arith.constant 0 : index
    %c0_72 = arith.constant 0 : index
    %209 = vector.load %arg2[%208, %c0_71, %c0_72] : memref<8x8x1xf32, #tpu.memory_space<vmem>>, vector<1x8x1xf32>
    %210 = vector.shape_cast %209 : vector<1x8x1xf32> to vector<8x1xf32>
    %211 = vector.extract_strided_slice %188 {offsets = [0, 16], sizes = [8, 16], strides = [1, 1]} : vector<8x32xf32> to vector<8x16xf32>
    %212 = vector.broadcast %210 : vector<8x1xf32> to vector<8x16xf32>
    %213 = arith.mulf %212, %211 : vector<8x16xf32>
    %214 = arith.addf %163, %213 : vector<8x16xf32>
    %c4_i32 = arith.constant 4 : i32
    %c8_i32_73 = arith.constant 8 : i32
    %215 = arith.muli %c4_i32, %c8_i32_73 : i32
    %216 = tpu.assume_multiple %215, 8 : i32
    %217 = arith.index_cast %216 : i32 to index
    %c0_74 = arith.constant 0 : index
    %218 = vector.load %arg11[%217, %c0_74] : memref<64x128xf32, #tpu.memory_space<vmem>>, vector<8x128xf32>
    %219 = arith.truncf %188 : vector<8x32xf32> to vector<8x32xbf16>
    %cst_75 = arith.constant dense<0.000000e+00> : vector<8x128xf32>
    %220 = tpu.matmul %219, %8, %cst_75 {dimension_numbers = #tpu.dot_dimension_numbers<[1], [0], [0], [1], [0, 0, 1, 1], [], []>} : vector<8x32xbf16>, vector<32x128xbf16>, vector<8x128xf32> -> vector<8x128xf32>
    %221 = arith.addf %218, %220 : vector<8x128xf32>
    %222 = arith.negf %221 : vector<8x128xf32>
    %223 = math.exp %222 : vector<8x128xf32>
    %cst_76 = arith.constant 1.000000e+00 : f32
    %224 = vector.broadcast %cst_76 : f32 to vector<8x128xf32>
    %225 = arith.addf %224, %223 : vector<8x128xf32>
    %226 = arith.divf %224, %225 : vector<8x128xf32>
    %227 = vector.extract_strided_slice %226 {offsets = [0, 0], sizes = [8, 32], strides = [1, 1]} : vector<8x128xf32> to vector<8x32xf32>
    %228 = vector.extract_strided_slice %226 {offsets = [0, 32], sizes = [8, 32], strides = [1, 1]} : vector<8x128xf32> to vector<8x32xf32>
    %229 = vector.extract_strided_slice %226 {offsets = [0, 64], sizes = [8, 32], strides = [1, 1]} : vector<8x128xf32> to vector<8x32xf32>
    %230 = vector.extract_strided_slice %226 {offsets = [0, 96], sizes = [8, 32], strides = [1, 1]} : vector<8x128xf32> to vector<8x32xf32>
    %cst_77 = arith.constant 2.000000e+00 : f32
    %231 = vector.broadcast %cst_77 : f32 to vector<8x32xf32>
    %232 = arith.mulf %231, %230 : vector<8x32xf32>
    %cst_78 = arith.constant 1.000000e+00 : f32
    %233 = vector.broadcast %cst_78 : f32 to vector<8x32xf32>
    %234 = arith.subf %232, %233 : vector<8x32xf32>
    %235 = arith.mulf %228, %186 : vector<8x32xf32>
    %236 = arith.mulf %227, %234 : vector<8x32xf32>
    %237 = arith.addf %235, %236 : vector<8x32xf32>
    %238 = math.tanh %237 : vector<8x32xf32>
    %239 = arith.mulf %229, %238 : vector<8x32xf32>
    %240 = vector.extract_strided_slice %239 {offsets = [0, 0], sizes = [8, 16], strides = [1, 1]} : vector<8x32xf32> to vector<8x16xf32>
    %241 = arith.index_cast %c4_i32 : i32 to index
    %c0_79 = arith.constant 0 : index
    %c0_80 = arith.constant 0 : index
    %242 = vector.load %arg12[%241, %c0_79, %c0_80] : memref<8x8x32xf32, #tpu.memory_space<vmem>>, vector<1x8x16xf32>
    %243 = vector.shape_cast %242 : vector<1x8x16xf32> to vector<8x16xf32>
    %244 = vector.shape_cast %240 : vector<8x16xf32> to vector<1x8x16xf32>
    tpu.vector_store %arg12[%241, %c0_79, %c0_80], %244 {strides = array<i32>} : memref<8x8x32xf32, #tpu.memory_space<vmem>>, vector<1x8x16xf32>,
    %245 = vector.extract_strided_slice %239 {offsets = [0, 16], sizes = [8, 16], strides = [1, 1]} : vector<8x32xf32> to vector<8x16xf32>
    %c7_i32_81 = arith.constant 7 : i32
    %246 = arith.subi %c7_i32_81, %c4_i32 : i32
    %247 = arith.index_cast %246 : i32 to index
    %c0_82 = arith.constant 0 : index
    %c16_83 = arith.constant 16 : index
    %248 = vector.load %arg12[%247, %c0_82, %c16_83] : memref<8x8x32xf32, #tpu.memory_space<vmem>>, vector<1x8x16xf32>
    %249 = vector.shape_cast %248 : vector<1x8x16xf32> to vector<8x16xf32>
    %250 = vector.shape_cast %245 : vector<8x16xf32> to vector<1x8x16xf32>
    tpu.vector_store %arg12[%247, %c0_82, %c16_83], %250 {strides = array<i32>} : memref<8x8x32xf32, #tpu.memory_space<vmem>>, vector<1x8x16xf32>,
    %251 = arith.index_cast %c4_i32 : i32 to index
    %c0_84 = arith.constant 0 : index
    %c0_85 = arith.constant 0 : index
    %252 = vector.load %arg2[%251, %c0_84, %c0_85] : memref<8x8x1xf32, #tpu.memory_space<vmem>>, vector<1x8x1xf32>
    %253 = vector.shape_cast %252 : vector<1x8x1xf32> to vector<8x1xf32>
    %254 = vector.extract_strided_slice %239 {offsets = [0, 0], sizes = [8, 16], strides = [1, 1]} : vector<8x32xf32> to vector<8x16xf32>
    %255 = vector.broadcast %253 : vector<8x1xf32> to vector<8x16xf32>
    %256 = arith.mulf %255, %254 : vector<8x16xf32>
    %257 = arith.addf %206, %256 : vector<8x16xf32>
    %c7_i32_86 = arith.constant 7 : i32
    %258 = arith.subi %c7_i32_86, %c4_i32 : i32
    %259 = arith.index_cast %258 : i32 to index
    %c0_87 = arith.constant 0 : index
    %c0_88 = arith.constant 0 : index
    %260 = vector.load %arg2[%259, %c0_87, %c0_88] : memref<8x8x1xf32, #tpu.memory_space<vmem>>, vector<1x8x1xf32>
    %261 = vector.shape_cast %260 : vector<1x8x1xf32> to vector<8x1xf32>
    %262 = vector.extract_strided_slice %239 {offsets = [0, 16], sizes = [8, 16], strides = [1, 1]} : vector<8x32xf32> to vector<8x16xf32>
    %263 = vector.broadcast %261 : vector<8x1xf32> to vector<8x16xf32>
    %264 = arith.mulf %263, %262 : vector<8x16xf32>
    %265 = arith.addf %214, %264 : vector<8x16xf32>
    %c5_i32 = arith.constant 5 : i32
    %c8_i32_89 = arith.constant 8 : i32
    %266 = arith.muli %c5_i32, %c8_i32_89 : i32
    %267 = tpu.assume_multiple %266, 8 : i32
    %268 = arith.index_cast %267 : i32 to index
    %c0_90 = arith.constant 0 : index
    %269 = vector.load %arg11[%268, %c0_90] : memref<64x128xf32, #tpu.memory_space<vmem>>, vector<8x128xf32>
    %270 = arith.truncf %239 : vector<8x32xf32> to vector<8x32xbf16>
    %cst_91 = arith.constant dense<0.000000e+00> : vector<8x128xf32>
    %271 = tpu.matmul %270, %8, %cst_91 {dimension_numbers = #tpu.dot_dimension_numbers<[1], [0], [0], [1], [0, 0, 1, 1], [], []>} : vector<8x32xbf16>, vector<32x128xbf16>, vector<8x128xf32> -> vector<8x128xf32>
    %272 = arith.addf %269, %271 : vector<8x128xf32>
    %273 = arith.negf %272 : vector<8x128xf32>
    %274 = math.exp %273 : vector<8x128xf32>
    %cst_92 = arith.constant 1.000000e+00 : f32
    %275 = vector.broadcast %cst_92 : f32 to vector<8x128xf32>
    %276 = arith.addf %275, %274 : vector<8x128xf32>
    %277 = arith.divf %275, %276 : vector<8x128xf32>
    %278 = vector.extract_strided_slice %277 {offsets = [0, 0], sizes = [8, 32], strides = [1, 1]} : vector<8x128xf32> to vector<8x32xf32>
    %279 = vector.extract_strided_slice %277 {offsets = [0, 32], sizes = [8, 32], strides = [1, 1]} : vector<8x128xf32> to vector<8x32xf32>
    %280 = vector.extract_strided_slice %277 {offsets = [0, 64], sizes = [8, 32], strides = [1, 1]} : vector<8x128xf32> to vector<8x32xf32>
    %281 = vector.extract_strided_slice %277 {offsets = [0, 96], sizes = [8, 32], strides = [1, 1]} : vector<8x128xf32> to vector<8x32xf32>
    %cst_93 = arith.constant 2.000000e+00 : f32
    %282 = vector.broadcast %cst_93 : f32 to vector<8x32xf32>
    %283 = arith.mulf %282, %281 : vector<8x32xf32>
    %cst_94 = arith.constant 1.000000e+00 : f32
    %284 = vector.broadcast %cst_94 : f32 to vector<8x32xf32>
    %285 = arith.subf %283, %284 : vector<8x32xf32>
    %286 = arith.mulf %279, %237 : vector<8x32xf32>
    %287 = arith.mulf %278, %285 : vector<8x32xf32>
    %288 = arith.addf %286, %287 : vector<8x32xf32>
    %289 = math.tanh %288 : vector<8x32xf32>
    %290 = arith.mulf %280, %289 : vector<8x32xf32>
    %291 = vector.extract_strided_slice %290 {offsets = [0, 0], sizes = [8, 16], strides = [1, 1]} : vector<8x32xf32> to vector<8x16xf32>
    %292 = arith.index_cast %c5_i32 : i32 to index
    %c0_95 = arith.constant 0 : index
    %c0_96 = arith.constant 0 : index
    %293 = vector.load %arg12[%292, %c0_95, %c0_96] : memref<8x8x32xf32, #tpu.memory_space<vmem>>, vector<1x8x16xf32>
    %294 = vector.shape_cast %293 : vector<1x8x16xf32> to vector<8x16xf32>
    %295 = vector.shape_cast %291 : vector<8x16xf32> to vector<1x8x16xf32>
    tpu.vector_store %arg12[%292, %c0_95, %c0_96], %295 {strides = array<i32>} : memref<8x8x32xf32, #tpu.memory_space<vmem>>, vector<1x8x16xf32>,
    %296 = vector.extract_strided_slice %290 {offsets = [0, 16], sizes = [8, 16], strides = [1, 1]} : vector<8x32xf32> to vector<8x16xf32>
    %c7_i32_97 = arith.constant 7 : i32
    %297 = arith.subi %c7_i32_97, %c5_i32 : i32
    %298 = arith.index_cast %297 : i32 to index
    %c0_98 = arith.constant 0 : index
    %c16_99 = arith.constant 16 : index
    %299 = vector.load %arg12[%298, %c0_98, %c16_99] : memref<8x8x32xf32, #tpu.memory_space<vmem>>, vector<1x8x16xf32>
    %300 = vector.shape_cast %299 : vector<1x8x16xf32> to vector<8x16xf32>
    %301 = vector.shape_cast %296 : vector<8x16xf32> to vector<1x8x16xf32>
    tpu.vector_store %arg12[%298, %c0_98, %c16_99], %301 {strides = array<i32>} : memref<8x8x32xf32, #tpu.memory_space<vmem>>, vector<1x8x16xf32>,
    %302 = arith.index_cast %c5_i32 : i32 to index
    %c0_100 = arith.constant 0 : index
    %c0_101 = arith.constant 0 : index
    %303 = vector.load %arg2[%302, %c0_100, %c0_101] : memref<8x8x1xf32, #tpu.memory_space<vmem>>, vector<1x8x1xf32>
    %304 = vector.shape_cast %303 : vector<1x8x1xf32> to vector<8x1xf32>
    %305 = vector.extract_strided_slice %290 {offsets = [0, 0], sizes = [8, 16], strides = [1, 1]} : vector<8x32xf32> to vector<8x16xf32>
    %306 = vector.broadcast %304 : vector<8x1xf32> to vector<8x16xf32>
    %307 = arith.mulf %306, %305 : vector<8x16xf32>
    %308 = arith.addf %257, %307 : vector<8x16xf32>
    %c7_i32_102 = arith.constant 7 : i32
    %309 = arith.subi %c7_i32_102, %c5_i32 : i32
    %310 = arith.index_cast %309 : i32 to index
    %c0_103 = arith.constant 0 : index
    %c0_104 = arith.constant 0 : index
    %311 = vector.load %arg2[%310, %c0_103, %c0_104] : memref<8x8x1xf32, #tpu.memory_space<vmem>>, vector<1x8x1xf32>
    %312 = vector.shape_cast %311 : vector<1x8x1xf32> to vector<8x1xf32>
    %313 = vector.extract_strided_slice %290 {offsets = [0, 16], sizes = [8, 16], strides = [1, 1]} : vector<8x32xf32> to vector<8x16xf32>
    %314 = vector.broadcast %312 : vector<8x1xf32> to vector<8x16xf32>
    %315 = arith.mulf %314, %313 : vector<8x16xf32>
    %316 = arith.addf %265, %315 : vector<8x16xf32>
    %c6_i32 = arith.constant 6 : i32
    %c8_i32_105 = arith.constant 8 : i32
    %317 = arith.muli %c6_i32, %c8_i32_105 : i32
    %318 = tpu.assume_multiple %317, 8 : i32
    %319 = arith.index_cast %318 : i32 to index
    %c0_106 = arith.constant 0 : index
    %320 = vector.load %arg11[%319, %c0_106] : memref<64x128xf32, #tpu.memory_space<vmem>>, vector<8x128xf32>
    %321 = arith.truncf %290 : vector<8x32xf32> to vector<8x32xbf16>
    %cst_107 = arith.constant dense<0.000000e+00> : vector<8x128xf32>
    %322 = tpu.matmul %321, %8, %cst_107 {dimension_numbers = #tpu.dot_dimension_numbers<[1], [0], [0], [1], [0, 0, 1, 1], [], []>} : vector<8x32xbf16>, vector<32x128xbf16>, vector<8x128xf32> -> vector<8x128xf32>
    %323 = arith.addf %320, %322 : vector<8x128xf32>
    %324 = arith.negf %323 : vector<8x128xf32>
    %325 = math.exp %324 : vector<8x128xf32>
    %cst_108 = arith.constant 1.000000e+00 : f32
    %326 = vector.broadcast %cst_108 : f32 to vector<8x128xf32>
    %327 = arith.addf %326, %325 : vector<8x128xf32>
    %328 = arith.divf %326, %327 : vector<8x128xf32>
    %329 = vector.extract_strided_slice %328 {offsets = [0, 0], sizes = [8, 32], strides = [1, 1]} : vector<8x128xf32> to vector<8x32xf32>
    %330 = vector.extract_strided_slice %328 {offsets = [0, 32], sizes = [8, 32], strides = [1, 1]} : vector<8x128xf32> to vector<8x32xf32>
    %331 = vector.extract_strided_slice %328 {offsets = [0, 64], sizes = [8, 32], strides = [1, 1]} : vector<8x128xf32> to vector<8x32xf32>
    %332 = vector.extract_strided_slice %328 {offsets = [0, 96], sizes = [8, 32], strides = [1, 1]} : vector<8x128xf32> to vector<8x32xf32>
    %cst_109 = arith.constant 2.000000e+00 : f32
    %333 = vector.broadcast %cst_109 : f32 to vector<8x32xf32>
    %334 = arith.mulf %333, %332 : vector<8x32xf32>
    %cst_110 = arith.constant 1.000000e+00 : f32
    %335 = vector.broadcast %cst_110 : f32 to vector<8x32xf32>
    %336 = arith.subf %334, %335 : vector<8x32xf32>
    %337 = arith.mulf %330, %288 : vector<8x32xf32>
    %338 = arith.mulf %329, %336 : vector<8x32xf32>
    %339 = arith.addf %337, %338 : vector<8x32xf32>
    %340 = math.tanh %339 : vector<8x32xf32>
    %341 = arith.mulf %331, %340 : vector<8x32xf32>
    %342 = vector.extract_strided_slice %341 {offsets = [0, 0], sizes = [8, 16], strides = [1, 1]} : vector<8x32xf32> to vector<8x16xf32>
    %343 = arith.index_cast %c6_i32 : i32 to index
    %c0_111 = arith.constant 0 : index
    %c0_112 = arith.constant 0 : index
    %344 = vector.load %arg12[%343, %c0_111, %c0_112] : memref<8x8x32xf32, #tpu.memory_space<vmem>>, vector<1x8x16xf32>
    %345 = vector.shape_cast %344 : vector<1x8x16xf32> to vector<8x16xf32>
    %346 = vector.shape_cast %342 : vector<8x16xf32> to vector<1x8x16xf32>
    tpu.vector_store %arg12[%343, %c0_111, %c0_112], %346 {strides = array<i32>} : memref<8x8x32xf32, #tpu.memory_space<vmem>>, vector<1x8x16xf32>,
    %347 = vector.extract_strided_slice %341 {offsets = [0, 16], sizes = [8, 16], strides = [1, 1]} : vector<8x32xf32> to vector<8x16xf32>
    %c7_i32_113 = arith.constant 7 : i32
    %348 = arith.subi %c7_i32_113, %c6_i32 : i32
    %349 = arith.index_cast %348 : i32 to index
    %c0_114 = arith.constant 0 : index
    %c16_115 = arith.constant 16 : index
    %350 = vector.load %arg12[%349, %c0_114, %c16_115] : memref<8x8x32xf32, #tpu.memory_space<vmem>>, vector<1x8x16xf32>
    %351 = vector.shape_cast %350 : vector<1x8x16xf32> to vector<8x16xf32>
    %352 = vector.shape_cast %347 : vector<8x16xf32> to vector<1x8x16xf32>
    tpu.vector_store %arg12[%349, %c0_114, %c16_115], %352 {strides = array<i32>} : memref<8x8x32xf32, #tpu.memory_space<vmem>>, vector<1x8x16xf32>,
    %353 = arith.index_cast %c6_i32 : i32 to index
    %c0_116 = arith.constant 0 : index
    %c0_117 = arith.constant 0 : index
    %354 = vector.load %arg2[%353, %c0_116, %c0_117] : memref<8x8x1xf32, #tpu.memory_space<vmem>>, vector<1x8x1xf32>
    %355 = vector.shape_cast %354 : vector<1x8x1xf32> to vector<8x1xf32>
    %356 = vector.extract_strided_slice %341 {offsets = [0, 0], sizes = [8, 16], strides = [1, 1]} : vector<8x32xf32> to vector<8x16xf32>
    %357 = vector.broadcast %355 : vector<8x1xf32> to vector<8x16xf32>
    %358 = arith.mulf %357, %356 : vector<8x16xf32>
    %359 = arith.addf %308, %358 : vector<8x16xf32>
    %c7_i32_118 = arith.constant 7 : i32
    %360 = arith.subi %c7_i32_118, %c6_i32 : i32
    %361 = arith.index_cast %360 : i32 to index
    %c0_119 = arith.constant 0 : index
    %c0_120 = arith.constant 0 : index
    %362 = vector.load %arg2[%361, %c0_119, %c0_120] : memref<8x8x1xf32, #tpu.memory_space<vmem>>, vector<1x8x1xf32>
    %363 = vector.shape_cast %362 : vector<1x8x1xf32> to vector<8x1xf32>
    %364 = vector.extract_strided_slice %341 {offsets = [0, 16], sizes = [8, 16], strides = [1, 1]} : vector<8x32xf32> to vector<8x16xf32>
    %365 = vector.broadcast %363 : vector<8x1xf32> to vector<8x16xf32>
    %366 = arith.mulf %365, %364 : vector<8x16xf32>
    %367 = arith.addf %316, %366 : vector<8x16xf32>
    %c7_i32_121 = arith.constant 7 : i32
    %c8_i32_122 = arith.constant 8 : i32
    %368 = arith.muli %c7_i32_121, %c8_i32_122 : i32
    %369 = tpu.assume_multiple %368, 8 : i32
    %370 = arith.index_cast %369 : i32 to index
    %c0_123 = arith.constant 0 : index
    %371 = vector.load %arg11[%370, %c0_123] : memref<64x128xf32, #tpu.memory_space<vmem>>, vector<8x128xf32>
    %372 = arith.truncf %341 : vector<8x32xf32> to vector<8x32xbf16>
    %cst_124 = arith.constant dense<0.000000e+00> : vector<8x128xf32>
    %373 = tpu.matmul %372, %8, %cst_124 {dimension_numbers = #tpu.dot_dimension_numbers<[1], [0], [0], [1], [0, 0, 1, 1], [], []>} : vector<8x32xbf16>, vector<32x128xbf16>, vector<8x128xf32> -> vector<8x128xf32>
    %374 = arith.addf %371, %373 : vector<8x128xf32>
    %375 = arith.negf %374 : vector<8x128xf32>
    %376 = math.exp %375 : vector<8x128xf32>
    %cst_125 = arith.constant 1.000000e+00 : f32
    %377 = vector.broadcast %cst_125 : f32 to vector<8x128xf32>
    %378 = arith.addf %377, %376 : vector<8x128xf32>
    %379 = arith.divf %377, %378 : vector<8x128xf32>
    %380 = vector.extract_strided_slice %379 {offsets = [0, 0], sizes = [8, 32], strides = [1, 1]} : vector<8x128xf32> to vector<8x32xf32>
    %381 = vector.extract_strided_slice %379 {offsets = [0, 32], sizes = [8, 32], strides = [1, 1]} : vector<8x128xf32> to vector<8x32xf32>
    %382 = vector.extract_strided_slice %379 {offsets = [0, 64], sizes = [8, 32], strides = [1, 1]} : vector<8x128xf32> to vector<8x32xf32>
    %383 = vector.extract_strided_slice %379 {offsets = [0, 96], sizes = [8, 32], strides = [1, 1]} : vector<8x128xf32> to vector<8x32xf32>
    %cst_126 = arith.constant 2.000000e+00 : f32
    %384 = vector.broadcast %cst_126 : f32 to vector<8x32xf32>
    %385 = arith.mulf %384, %383 : vector<8x32xf32>
    %cst_127 = arith.constant 1.000000e+00 : f32
    %386 = vector.broadcast %cst_127 : f32 to vector<8x32xf32>
    %387 = arith.subf %385, %386 : vector<8x32xf32>
    %388 = arith.mulf %381, %339 : vector<8x32xf32>
    %389 = arith.mulf %380, %387 : vector<8x32xf32>
    %390 = arith.addf %388, %389 : vector<8x32xf32>
    %391 = math.tanh %390 : vector<8x32xf32>
    %392 = arith.mulf %382, %391 : vector<8x32xf32>
    %393 = vector.extract_strided_slice %392 {offsets = [0, 0], sizes = [8, 16], strides = [1, 1]} : vector<8x32xf32> to vector<8x16xf32>
    %394 = arith.index_cast %c7_i32_121 : i32 to index
    %c0_128 = arith.constant 0 : index
    %c0_129 = arith.constant 0 : index
    %395 = vector.load %arg12[%394, %c0_128, %c0_129] : memref<8x8x32xf32, #tpu.memory_space<vmem>>, vector<1x8x16xf32>
    %396 = vector.shape_cast %395 : vector<1x8x16xf32> to vector<8x16xf32>
    %397 = vector.shape_cast %393 : vector<8x16xf32> to vector<1x8x16xf32>
    tpu.vector_store %arg12[%394, %c0_128, %c0_129], %397 {strides = array<i32>} : memref<8x8x32xf32, #tpu.memory_space<vmem>>, vector<1x8x16xf32>,
    %398 = vector.extract_strided_slice %392 {offsets = [0, 16], sizes = [8, 16], strides = [1, 1]} : vector<8x32xf32> to vector<8x16xf32>
    %c7_i32_130 = arith.constant 7 : i32
    %399 = arith.subi %c7_i32_130, %c7_i32_121 : i32
    %400 = arith.index_cast %399 : i32 to index
    %c0_131 = arith.constant 0 : index
    %c16_132 = arith.constant 16 : index
    %401 = vector.load %arg12[%400, %c0_131, %c16_132] : memref<8x8x32xf32, #tpu.memory_space<vmem>>, vector<1x8x16xf32>
    %402 = vector.shape_cast %401 : vector<1x8x16xf32> to vector<8x16xf32>
    %403 = vector.shape_cast %398 : vector<8x16xf32> to vector<1x8x16xf32>
    tpu.vector_store %arg12[%400, %c0_131, %c16_132], %403 {strides = array<i32>} : memref<8x8x32xf32, #tpu.memory_space<vmem>>, vector<1x8x16xf32>,
    %404 = arith.index_cast %c7_i32_121 : i32 to index
    %c0_133 = arith.constant 0 : index
    %c0_134 = arith.constant 0 : index
    %405 = vector.load %arg2[%404, %c0_133, %c0_134] : memref<8x8x1xf32, #tpu.memory_space<vmem>>, vector<1x8x1xf32>
    %406 = vector.shape_cast %405 : vector<1x8x1xf32> to vector<8x1xf32>
    %407 = vector.extract_strided_slice %392 {offsets = [0, 0], sizes = [8, 16], strides = [1, 1]} : vector<8x32xf32> to vector<8x16xf32>
    %408 = vector.broadcast %406 : vector<8x1xf32> to vector<8x16xf32>
    %409 = arith.mulf %408, %407 : vector<8x16xf32>
    %410 = arith.addf %359, %409 : vector<8x16xf32>
    %c7_i32_135 = arith.constant 7 : i32
    %411 = arith.subi %c7_i32_135, %c7_i32_121 : i32
    %412 = arith.index_cast %411 : i32 to index
    %c0_136 = arith.constant 0 : index
    %c0_137 = arith.constant 0 : index
    %413 = vector.load %arg2[%412, %c0_136, %c0_137] : memref<8x8x1xf32, #tpu.memory_space<vmem>>, vector<1x8x1xf32>
    %414 = vector.shape_cast %413 : vector<1x8x1xf32> to vector<8x1xf32>
    %415 = vector.extract_strided_slice %392 {offsets = [0, 16], sizes = [8, 16], strides = [1, 1]} : vector<8x32xf32> to vector<8x16xf32>
    %416 = vector.broadcast %414 : vector<8x1xf32> to vector<8x16xf32>
    %417 = arith.mulf %416, %415 : vector<8x16xf32>
    %418 = arith.addf %367, %417 : vector<8x16xf32>
    %c8_i32_138 = arith.constant 8 : i32
    %419 = tpu.concatenate %410, %418 in 1 : vector<8x16xf32>, vector<8x16xf32> -> vector<8x32xf32>
    %c0_139 = arith.constant 0 : index
    %c0_140 = arith.constant 0 : index
    %c0_141 = arith.constant 0 : index
    %420 = vector.load %arg12[%c0_139, %c0_140, %c0_141] : memref<8x8x32xf32, #tpu.memory_space<vmem>>, vector<8x8x32xf32>
    %421 = vector.shape_cast %420 : vector<8x8x32xf32> to vector<64x32xf32>
    %c0_142 = arith.constant 0 : index
    %c0_143 = arith.constant 0 : index
    %422 = vector.load %arg6[%c0_142, %c0_143] : memref<32x32xf32, #tpu.memory_space<vmem>>, vector<32x32xf32>
    %cst_144 = arith.constant dense<0.000000e+00> : vector<64x32xf32>
    %423 = tpu.matmul %421, %422, %cst_144 {dimension_numbers = #tpu.dot_dimension_numbers<[1], [0], [0], [1], [0, 0, 1, 1], [], []>} : vector<64x32xf32>, vector<32x32xf32>, vector<64x32xf32> -> vector<64x32xf32>
    %424 = vector.shape_cast %423 : vector<64x32xf32> to vector<8x8x32xf32>
    %425 = vector.shape_cast %419 : vector<8x32xf32> to vector<1x8x32xf32>
    %426 = vector.broadcast %425 : vector<1x8x32xf32> to vector<8x8x32xf32>
    %427 = arith.mulf %420, %426 : vector<8x8x32xf32>
    %cst_145 = arith.constant dense<0.000000e+00> : vector<8x8xf32>
    %428 = vector.multi_reduction <add>, %427, %cst_145 [2] : vector<8x8x32xf32> to vector<8x8xf32>
    %429 = vector.shape_cast %428 : vector<8x8xf32> to vector<8x8x1xf32>
    %cst_146 = arith.constant dense<0xFF800000> : vector<8x1xf32>
    %430 = vector.multi_reduction <maximumf>, %429, %cst_146 [0] : vector<8x8x1xf32> to vector<8x1xf32>
    %431 = vector.shape_cast %430 : vector<8x1xf32> to vector<1x8x1xf32>
    %432 = vector.broadcast %431 : vector<1x8x1xf32> to vector<8x8x1xf32>
    %433 = arith.subf %429, %432 : vector<8x8x1xf32>
    %434 = math.exp %433 : vector<8x8x1xf32>
    %cst_147 = arith.constant dense<0.000000e+00> : vector<8x1xf32>
    %435 = vector.multi_reduction <add>, %434, %cst_147 [0] : vector<8x8x1xf32> to vector<8x1xf32>
    %436 = vector.shape_cast %435 : vector<8x1xf32> to vector<1x8x1xf32>
    %437 = tpu.reciprocal %436 {approx = true} : vector<1x8x1xf32> -> vector<1x8x1xf32>
    %438 = vector.broadcast %437 : vector<1x8x1xf32> to vector<8x8x1xf32>
    %439 = arith.mulf %434, %438 : vector<8x8x1xf32>
    %440 = vector.broadcast %439 : vector<8x8x1xf32> to vector<8x8x32xf32>
    %441 = arith.mulf %440, %424 : vector<8x8x32xf32>
    %cst_148 = arith.constant dense<0.000000e+00> : vector<8x32xf32>
    %442 = vector.multi_reduction <add>, %441, %cst_148 [0] : vector<8x8x32xf32> to vector<8x32xf32>
    %c0_149 = arith.constant 0 : index
    %c0_150 = arith.constant 0 : index
    %443 = vector.load %arg7[%c0_149, %c0_150] : memref<1x32xf32, #tpu.memory_space<vmem>>, vector<1x32xf32>
    %444 = vector.broadcast %443 : vector<1x32xf32> to vector<8x32xf32>
    %445 = arith.addf %442, %444 : vector<8x32xf32>
    %cst_151 = arith.constant 0.000000e+00 : f32
    %446 = vector.broadcast %cst_151 : f32 to vector<8x32xf32>
    %447 = arith.maximumf %445, %446 : vector<8x32xf32>
    %c0_152 = arith.constant 0 : index
    %c0_153 = arith.constant 0 : index
    %448 = vector.load %arg8[%c0_152, %c0_153] : memref<32x8xf32, #tpu.memory_space<vmem>>, vector<32x8xf32>
    %cst_154 = arith.constant dense<0.000000e+00> : vector<8x8xf32>
    %449 = tpu.matmul %447, %448, %cst_154 {dimension_numbers = #tpu.dot_dimension_numbers<[1], [0], [0], [1], [0, 0, 1, 1], [], []>} : vector<8x32xf32>, vector<32x8xf32>, vector<8x8xf32> -> vector<8x8xf32>
    %c0_155 = arith.constant 0 : index
    %c0_156 = arith.constant 0 : index
    %450 = vector.load %arg9[%c0_155, %c0_156] : memref<1x8xf32, #tpu.memory_space<vmem>>, vector<1x8xf32>
    %451 = vector.broadcast %450 : vector<1x8xf32> to vector<8x8xf32>
    %452 = arith.addf %449, %451 : vector<8x8xf32>
    %cst_157 = arith.constant dense<0xFF800000> : vector<8xf32>
    %453 = vector.multi_reduction <maximumf>, %452, %cst_157 [1] : vector<8x8xf32> to vector<8xf32>
    %454 = vector.shape_cast %453 : vector<8xf32> to vector<8x1xf32>
    %455 = vector.broadcast %454 : vector<8x1xf32> to vector<8x8xf32>
    %456 = arith.subf %452, %455 : vector<8x8xf32>
    %457 = math.exp %456 : vector<8x8xf32>
    %cst_158 = arith.constant dense<0.000000e+00> : vector<8xf32>
    %458 = vector.multi_reduction <add>, %457, %cst_158 [1] : vector<8x8xf32> to vector<8xf32>
    %459 = vector.shape_cast %458 : vector<8xf32> to vector<8x1xf32>
    %460 = math.log %459 : vector<8x1xf32>
    %461 = vector.broadcast %460 : vector<8x1xf32> to vector<8x8xf32>
    %462 = arith.subf %456, %461 : vector<8x8xf32>
    %c0_159 = arith.constant 0 : index
    %c0_160 = arith.constant 0 : index
    %463 = vector.load %arg10[%c0_159, %c0_160] : memref<8x8xf32, #tpu.memory_space<vmem>>, vector<8x8xf32>
    tpu.vector_store %arg10[%c0_159, %c0_160], %462 {strides = array<i32>} : memref<8x8xf32, #tpu.memory_space<vmem>>, vector<8x8xf32>,
    return
  }
  func.func @transform_0(%arg0: i32) -> (i32, i32, i32) {
    %c0_i32 = arith.constant 0 : i32
    %c0_i32_0 = arith.constant 0 : i32
    %c0_i32_1 = arith.constant 0 : i32
    return %arg0, %c0_i32, %c0_i32_0 : i32, i32, i32
  }
  func.func @transform_1(%arg0: i32) -> (i32, i32, i32) {
    %c0_i32 = arith.constant 0 : i32
    %c0_i32_0 = arith.constant 0 : i32
    %c0_i32_1 = arith.constant 0 : i32
    return %c0_i32, %arg0, %c0_i32_0 : i32, i32, i32
  }
  func.func @transform_2(%arg0: i32) -> (i32, i32) {
    %c0_i32 = arith.constant 0 : i32
    %c0_i32_0 = arith.constant 0 : i32
    %c0_i32_1 = arith.constant 0 : i32
    return %c0_i32, %c0_i32_0 : i32, i32
  }
  func.func @transform_3(%arg0: i32) -> (i32, i32) {
    %c0_i32 = arith.constant 0 : i32
    %c0_i32_0 = arith.constant 0 : i32
    %c0_i32_1 = arith.constant 0 : i32
    return %c0_i32, %c0_i32_0 : i32, i32
  }
  func.func @transform_4(%arg0: i32) -> (i32, i32) {
    %c0_i32 = arith.constant 0 : i32
    %c0_i32_0 = arith.constant 0 : i32
    %c0_i32_1 = arith.constant 0 : i32
    return %c0_i32, %c0_i32_0 : i32, i32
  }
  func.func @transform_5(%arg0: i32) -> (i32, i32) {
    %c0_i32 = arith.constant 0 : i32
    %c0_i32_0 = arith.constant 0 : i32
    %c0_i32_1 = arith.constant 0 : i32
    return %c0_i32, %c0_i32_0 : i32, i32
  }
  func.func @transform_6(%arg0: i32) -> (i32, i32) {
    %c0_i32 = arith.constant 0 : i32
    %c0_i32_0 = arith.constant 0 : i32
    %c0_i32_1 = arith.constant 0 : i32
    return %c0_i32, %c0_i32_0 : i32, i32
  }
  func.func @transform_7(%arg0: i32) -> (i32, i32) {
    %c0_i32 = arith.constant 0 : i32
    %c0_i32_0 = arith.constant 0 : i32
    %c0_i32_1 = arith.constant 0 : i32
    return %c0_i32, %c0_i32_0 : i32, i32
  }
  func.func @transform_8(%arg0: i32) -> (i32, i32) {
    %c0_i32 = arith.constant 0 : i32
    %c0_i32_0 = arith.constant 0 : i32
    %c0_i32_1 = arith.constant 0 : i32
    return %c0_i32, %c0_i32_0 : i32, i32
  }
  func.func @transform_9(%arg0: i32) -> (i32, i32) {
    %c0_i32 = arith.constant 0 : i32
    %c0_i32_0 = arith.constant 0 : i32
    return %arg0, %c0_i32 : i32, i32
  }
}

</mosaic_0001>

<bundles_post_ra>
// kernel: mul_enti_attn_dot_rnn.1
= control target key start
LH: loop header
LB: loop body
LE: loop exit
PB: predicated region body
PF: predicated region fallthrough
CT: control target
= control target key end

     0   :  { %s2229_s30 = smov 0   ;;  %s2231_s10 = smov 0   ;;  %s2601_s0 = inlined_call_operand.vmem [shape: bf16[2,64,64], index: 0, kind: input, shape index: {}]   ;;  %s2602_s1 = inlined_call_operand.vmem [shape: f32[8,16,1], index: 1, kind: input, shape index: {}]   ;;  %s2603_s2 = inlined_call_operand.vmem [shape: bf16[64,128], index: 2, kind: input, shape index: {}]   ;;  %s2604_s3 = inlined_call_operand.vmem [shape: f32[1,128], index: 3, kind: input, shape index: {}]   ;;  %s2605_s4 = inlined_call_operand.vmem [shape: bf16[32,128], index: 4, kind: input, shape index: {}]   ;;  %s2606_s5 = inlined_call_operand.vmem [shape: f32[32,32], index: 5, kind: input, shape index: {}]   ;;  %s2607_s6 = inlined_call_operand.vmem [shape: f32[1,32], index: 6, kind: input, shape index: {}]   ;;  %s2608_s7 = inlined_call_operand.vmem [shape: f32[32,8], index: 7, kind: input, shape index: {}]   ;;  %s2609_s8 = inlined_call_operand.vmem [shape: f32[1,8], index: 8, kind: input, shape index: {}]   ;;  %s2610_s9 = inlined_call_operand.vmem [shape: f32[16,8], index: 9, kind: output, shape index: {}]  }
   0x1   :  { %s2233_s11 = smov 0  }
   0x2 LB: > { %s1802_s12 = sadd.s32 4294967295, %s2172_s11   ;;  %s2246_s13 = sadd.s32 1, %s2172_s11   ;;  %s2172_s11 = sphi %s2233_s11, %s2613_s11   ;;  %s2168_s10 = sphi %s2231_s10, %s2612_s10   ;;  %s2164_s30 = sphi %s2229_s30, %s2611_s30  }
   0x3   : > { %s49_s14 = ssub.s32 %s2172_s11, %s2246_s13  ;;  %s52_s15 = sadd.s32 1, %s2168_s10 }
   0x4   : > { %p50_p0 = scmp.eq.s32.totalorder %s49_s14, 0  ;;  %p59_p1 = scmp.ne.s32.totalorder %s2168_s10, %s2164_s30 }
   0x5   : > { %p60_p2 = scmp.eq.s32.totalorder %s2172_s11, 0  ;;  %p1805_p4 = scmp.ge.s32.totalorder %s2172_s11, 2 }
   0x6   : > { %s2255_s16 = scalar_select %p50_p0, %s2168_s10, %s52_s15  }
   0x7   : > { %p61_p3 = por %p60_p2, %p59_p1  ;;  %279 = sbr.rel (%p1805_p4) target bundleno = 20 (0x14), region = 44 }
   0xc   : > { %290 = sbr.rel (!%p61_p3) target bundleno = 20 (0x14), region = 52  ;;  %s292_s17 = sand.u32 (%p61_p3), 1, %s2168_s10  }
   0xd   : > { %s1807_s18 = sshll.u32 (%p61_p3), %s2172_s11, 3  ;;  %s1806_s19 = sshll.u32 (%p61_p3), %s292_s17, 6 }
   0xe   : > { %s296_s22 = scalar_lea.vmem (%p61_p3), %s2602_s1, %s1807_s18  ;;  %s294_s23 = scalar_lea.vmem (%p61_p3), [#allocation4], %s1806_s19 }
   0xf   : > { %v339_v0 = vld [vmem:[%s296_s22] sm:$0xff] (%p61_p3)  ;;  %v341_v1 = vld [vmem:[%s296_s22 + $0x10] sm:$0xff] (%p61_p3) }
  0x10   : > { %v343_v2 = vld [vmem:[%s296_s22 + $0x20] sm:$0xff] (%p61_p3)  ;;  %340 = vst [vmem:[%s294_s23] sm:$0xff] (%p61_p3), %v339_v0  ;;  %342 = vst [vmem:[%s294_s23 + $0x8] sm:$0xff] (%p61_p3), %v341_v1  ;;  %v345_v3 = vld [vmem:[%s296_s22 + $0x30] sm:$0xff] (%p61_p3) }
  0x11   : > { %344 = vst [vmem:[%s294_s23 + $0x10] sm:$0xff] %v343_v2  ;;  %v347_v4 = vld [vmem:[%s296_s22 + $0x40] sm:$0xff]  ;;  %v349_v5 = vld [vmem:[%s296_s22 + $0x50] sm:$0xff]  ;;  %346 = vst [vmem:[%s294_s23 + $0x18] sm:$0xff] %v345_v3 }
  0x12   : > { %348 = vst [vmem:[%s294_s23 + $0x20] sm:$0xff] %v347_v4  ;;  %350 = vst [vmem:[%s294_s23 + $0x28] sm:$0xff] %v349_v5  ;;  %v351_v6 = vld [vmem:[%s296_s22 + $0x60] sm:$0xff]  ;;  %v353_v7 = vld [vmem:[%s296_s22 + $0x70] sm:$0xff] }
  0x13   : > { %352 = vst [vmem:[%s294_s23 + $0x30] sm:$0xff] %v351_v6  ;;  %354 = vst [vmem:[%s294_s23 + $0x38] sm:$0xff] %v353_v7 }
  0x14 PF: > { %p1808_p5 = scmp.ge.s32.totalorder %s2172_s11, 1  ;;  %p359_p6 = scmp.lt.s32.totalorder %s2172_s11, 3 }
  0x16   : > { %p360_p7 = pnand %p1808_p5, %p359_p6 }
  0x17   : > { %p405_p8 = scmp.lt.s32.totalorder (!%p360_p7), %s1802_s12, 1  ;;  %s2177_s26 = smov (!%p360_p7), 32  }
  0x18   : > { %363 = sbr.rel (%p360_p7) target bundleno = 6636 (0x19ec), region = 90  ;;  %s2178_s27 = smov (!%p360_p7), 64  }
  0x19   : > { %s366_s28 = sand.u32 (!%p360_p7), 1, %s2164_s30  }
  0x1a   : > { %s1809_s29 = sshll.u32 (!%p360_p7), %s366_s28, 6 }
  0x1b   : > { %s2458_s14 = scalar_lea.vmem (!%p360_p7), [#allocation4], %s1809_s29 }
  0x1d   : > { %v2070_v8 = vld [vmem:[%s2603_s2 + $0x18] sm:$0xff]   ;;  %v2071_v9 = vld [vmem:[%s2603_s2 + $0x10] sm:$0xff]   ;;  %v2174_v10 = vmov 0.0   ;;  %v2275_v11 = vld [vmem:[%s2605_s4 + $0x8] sm:$0xff]   ;;  %vm2175_vm0 = vmmov 0   ;;  %v2176_v13 = vmov 0  }
  0x1e   : > { %1944 = vmatprep.subr.bf16.mxu1 %v2174_v10  ;;  %1928 = vmatprep.subr.bf16.mxu0 %v2070_v8  ;;  %v2073_v12 = vld [vmem:[%s2603_s2 + $0x8] sm:$0xff]   ;;  %v2288_v14 = vld [vmem:[%s2605_s4] sm:$0xff]   ;;  %s2615_s12 = smov (!%p405_p8, %s1802_s12), 1  ;;  %vm482_vm1 = vcmask 523264   ;;  %vm585_vm2 = vcmask 261120   ;;  %vm659_vm3 = vcmask 130048  }
  0x1f   : > { %1948 = vmatprep.mubr.msk.bf16.mxu1 %vm2175_vm0, %v2174_v10  ;;  %1929 = vmatpush3.bf16.msra.mxu0 %v2070_v8  ;;  %s1878_s19 = sshll.u32 %s2615_s12, 5  ;;  %v2075_v15 = vld [vmem:[%s2603_s2] sm:$0xff]   ;;  %vm662_vm4 = vcmask 261248   ;;  %vm1717_vm5 = vcmask 64512   ;;  %s1812_s18 = sshll.u32 %s2615_s12, 3 }
  0x20   : > { %2069 = vset.pattern.permute.xlu1 %v2176_v13  ;;  %1930 = vmatprep.subr.bf16.mxu0 %v2071_v9  ;;  %s2303_s24 = scalar_lea.vmem %s2601_s0, %s1878_s19  ;;  %v2326_v23 = vld [vmem:[%s2604_s3] ss:$0 sm:$0xff]  ;;  %s413_s21 = scalar_lea.vmem %s2610_s9, %s1812_s18 }
  0x21   : > { %1945 = vmatpush3.bf16.msra.mxu1 %v2275_v11  ;;  %2068 = vset.pattern.permute.xlu0 %v2176_v13  ;;  %v2076_v16 = vld [vmem:[%s2303_s24] sm:$0xff]   ;;  %v2077_v17 = vld [vmem:[%s2303_s24 + $0x8] sm:$0xff]  }
  0x22   : > { %1946 = vmatprep.subr.bf16.mxu1 %v2174_v10  ;;  %1936 = vmatprep.mubr.msk.bf16.mxu0 %vm482_vm1, %v2076_v16 }
  0x23   : > { %1931 = vmatpush3.bf16.msra.mxu0 %v2071_v9 }
  0x24   : > { %1932 = vmatprep.subr.bf16.mxu0 %v2073_v12 }
  0x25   : > { %1947 = vmatpush3.bf16.msra.mxu1 %v2288_v14 }
  0x26   : > { %1952 = vmatprep.subr.bf16.mxu1 %v2174_v10 }
  0x27   : > { %1933 = vmatpush3.bf16.msra.mxu0 %v2073_v12 }
  0x28   : > { %1949 = vmatmul.mubr.bf16.vlgmr.msra.gmra.mxu1 %v2176_v13  ;;  %1934 = vmatprep.subr.bf16.mxu0 %v2075_v15 }
  0x29   : > { %1953 = vmatpush3.bf16.msra.mxu1 %v2275_v11  ;;  %1956 = vmatprep.mubr.msk.bf16.mxu1 %vm2175_vm0, %v2174_v10 }
  0x2a   : > { %1954 = vmatprep.subr.bf16.mxu1 %v2174_v10 }
  0x2b   : > { %1935 = vmatpush3.bf16.msra.mxu0 %v2075_v15 }
  0x2c   : > { %1968 = vmatprep.subr.bf16.mxu0 %v2174_v10 }
  0x2d   : > { %1955 = vmatpush3.bf16.msra.mxu1 %v2288_v14 }
  0x2e   : > { %1937 = vmatmul.mubr.msk.bf16.vlgmr.msra.gmra.mxu0 %vm482_vm1, %v2077_v17  ;;  %1960 = vmatprep.subr.bf16.mxu1 %v2174_v10 }
  0x2f   : > { %1969 = vmatpush3.bf16.msra.mxu0 %v2275_v11 }
  0x30   : > { %1970 = vmatprep.subr.bf16.mxu0 %v2174_v10 }
  0x33   : > { %1971 = vmatpush3.bf16.msra.mxu0 %v2288_v14 }
  0x34   : > { %1984 = vmatprep.subr.bf16.mxu0 %v2174_v10 }
  0xe8   : > { %v623_v18 = vpop.f32.mrf.mxu1 }
  0xea   : > { %v1950_v19 = vpop.f32.mrf.mxu1 }
  0xec   : > { %v626_v20 = vpop.f32.mrf.mxu1 }
  0xee   : > { %v1951_v21 = vpop.f32.mrf.mxu1  ;;  %v2321_v22 = vpop.f32.mrf.mxu0 }
  0xef   : > { %v538_v3 = vadd.f32 %v2321_v22, %v2326_v23 }
  0xf0   : > { %v529_v24 = vpop.f32.mrf.mxu0 }
  0xf1   : > { %v530_v25 = vadd.f32 %v2326_v23, %v529_v24  ;;  %v2078_v24 = vld [vmem:[%s2303_s24 + $0x10] sm:$0xff]  }
  0xf2   : > { %v2344_v43 = vpop.f32.mrf.mxu0  ;;  %1940 = vmatprep.mubr.msk.bf16.mxu0 %vm482_vm1, %v2078_v24 }
  0xf3   : > { %v629_v26 = vadd.f32 %v623_v18, %v530_v25  ;;  %v2079_v25 = vld [vmem:[%s2303_s24 + $0x18] sm:$0xff]  }
  0xf4   : > { %v532_v44 = vpop.f32.mrf.mxu0  ;;  %1941 = vmatmul.mubr.msk.bf16.gmra.mxu0 %vm482_vm1, %v2079_v25 }
  0xf5   : > { %v1828_v27 = vmul.f32 -1.442695, %v629_v26  ;;  %v533_v45 = vadd.f32 %v2326_v23, %v532_v44  ;;  %1972 = vmatprep.mubr.msk.bf16.mxu0 %vm2175_vm0, %v2174_v10 }
  0xf7   : > { %2080 = vpow2.f32 %v1828_v27 }
 0x104   : > { %v2081_v28 = vpop.eup %2080 }
 0x105   : > { %v633_v29 = vadd.f32 1.0, %v2081_v28 }
 0x107   : > { %2082 = vrcp.f32 %v633_v29 }
 0x114   : > { %v2083_v30 = vpop.eup %2082 }
 0x115   : > { %v636_v31 = vmul.f32 2.0, %v2083_v30  ;;  %v638_v35 = vmul.f32 0.0, %v2083_v30 }
 0x117   : > { %v1829_v32 = vadd.f32 -1.0, %v636_v31 }
 0x119   : > { %640 = vrot.lane.b32.xlu0 %v1829_v32, %s2177_s26 }
 0x18b   : > { %v641_v33 = vpop.permute.xlu0 %640 }
 0x18c   : > { %v643_v34 = vmul.f32 %v2083_v30, %v641_v33 }
 0x18e   : > { %645 = vrot.lane.b32.xlu0 %v643_v34, %s2177_s26 }
 0x1b4   : > { %v2385_v31 = vpop.f32.mrf.mxu0 }
 0x1b6   : > { %v545_v32 = vpop.f32.mrf.mxu0 }
 0x1b8   : > { %v2387_v33 = vpop.f32.mrf.mxu0 }
 0x1ba   : > { %v2389_v34 = vpop.f32.mrf.mxu0 }
 0x200   : > { %v646_v36 = vpop.permute.xlu0 %645 }
 0x201   : > { %v648_v37 = vadd.f32 %v646_v36, %v638_v35  ;;  %v541_v35 = vadd.f32 %v2344_v43, %v2326_v23 }
 0x203   : > { %2084 = vtanh.f32 %v648_v37 }
 0x210   : > { %v2085_v38 = vpop.eup %2084 }
 0x211   : > { %651 = vrot.lane.b32.xlu1 %v2085_v38, %s2177_s26 }
 0x283   : > { %v652_v39 = vpop.permute.xlu1 %651 }
 0x284   : > { %v2332_v40 = vmul.f32 %v2083_v30, %v652_v39 }
 0x286   : > { %v683_v41 = vpack.c.bf16 %v2332_v40, %v2332_v40 }
 0x288   : > { %685 = vrot.lane.b32.xlu1 %v683_v41, %s2178_s27 }
 0x2fa   : > { %v686_v42 = vpop.permute.xlu1 %685 }
 0x2fb   : > { %1957 = vmatmul.mubr.msk.bf16.vlgmr.msra.gmra.mxu1 %vm585_vm2, %v686_v42 }
 0x2fc   : > { %1961 = vmatpush3.bf16.msra.mxu1 %v2275_v11  ;;  %1964 = vmatprep.mubr.msk.bf16.mxu1 %vm2175_vm0, %v2174_v10 }
 0x2fd   : > { %1962 = vmatprep.subr.bf16.mxu1 %v2174_v10 }
 0x300   : > { %1963 = vmatpush3.bf16.msra.mxu1 %v2288_v14 }
 0x301   : > { %1976 = vmatprep.subr.bf16.mxu1 %v2174_v10 }
 0x3bb   : > { %v724_v46 = vpop.f32.mrf.mxu1 }
 0x3bc   : > { %v730_v47 = vadd.f32 %v724_v46, %v533_v45 }
 0x3bd   : > { %v1958_v48 = vpop.f32.mrf.mxu1 }
 0x3be   : > { %v1832_v49 = vmul.f32 -1.442695, %v730_v47 }
 0x3bf   : > { %v727_v50 = vpop.f32.mrf.mxu1 }
 0x3c0   : > { %2086 = vpow2.f32 %v1832_v49 }
 0x3c1   : > { %v1959_v51 = vpop.f32.mrf.mxu1 }
 0x3cd   : > { %v2087_v52 = vpop.eup %2086 }
 0x3ce   : > { %v734_v53 = vadd.f32 1.0, %v2087_v52 }
 0x3d0   : > { %2088 = vrcp.f32 %v734_v53 }
 0x3dd   : > { %v2089_v54 = vpop.eup %2088 }
 0x3de   : > { %v737_v55 = vmul.f32 2.0, %v2089_v54  ;;  %v739_v59 = vmul.f32 %v2089_v54, %v648_v37 }
 0x3e0   : > { %v1833_v56 = vadd.f32 -1.0, %v737_v55 }
 0x3e2   : > { %741 = vrot.lane.b32.xlu0 %v1833_v56, %s2177_s26 }
 0x454   : > { %v742_v57 = vpop.permute.xlu0 %741 }
 0x455   : > { %v744_v58 = vmul.f32 %v2089_v54, %v742_v57 }
 0x457   : > { %746 = vrot.lane.b32.xlu1 %v744_v58, %s2177_s26  ;;  %v546_v58 = vadd.f32 %v2326_v23, %v545_v32 }
 0x4c9   : > { %v747_v60 = vpop.permute.xlu1 %746 }
 0x4ca   : > { %v749_v61 = vadd.f32 %v747_v60, %v739_v59 }
 0x4cc   : > { %2090 = vtanh.f32 %v749_v61 }
 0x4d9   : > { %v2091_v62 = vpop.eup %2090 }
 0x4da   : > { %752 = vrot.lane.b32.xlu0 %v2091_v62, %s2177_s26 }
 0x54c   : > { %v753_v63 = vpop.permute.xlu0 %752 }
 0x54d   : > { %v2350_v0 = vmul.f32 %v2089_v54, %v753_v63 }
 0x54f   : > { %v784_v1 = vpack.c.bf16 %v2350_v0, %v2350_v0 }
 0x551   : > { %786 = vrot.lane.b32.xlu1 %v784_v1, %s2178_s27 }
 0x5c3   : > { %v787_v2 = vpop.permute.xlu1 %786 }
 0x5c4   : > { %1965 = vmatmul.mubr.msk.bf16.vlgmr.msra.gmra.mxu1 %vm585_vm2, %v787_v2 }
 0x5c5   : > { %1977 = vmatpush3.bf16.msra.mxu1 %v2275_v11  ;;  %1980 = vmatprep.mubr.msk.bf16.mxu1 %vm2175_vm0, %v2174_v10 }
 0x5c6   : > { %1978 = vmatprep.subr.bf16.mxu1 %v2174_v10 }
 0x5c9   : > { %1979 = vmatpush3.bf16.msra.mxu1 %v2288_v14 }
 0x5ca   : > { %1992 = vmatprep.subr.bf16.mxu1 %v2174_v10 }
 0x684   : > { %v825_v4 = vpop.f32.mrf.mxu1 }
 0x685   : > { %v831_v5 = vadd.f32 %v825_v4, %v538_v3 }
 0x686   : > { %v1966_v6 = vpop.f32.mrf.mxu1 }
 0x687   : > { %v1837_v7 = vmul.f32 -1.442695, %v831_v5 }
 0x688   : > { %v828_v8 = vpop.f32.mrf.mxu1 }
 0x689   : > { %2092 = vpow2.f32 %v1837_v7 }
 0x68a   : > { %v1967_v9 = vpop.f32.mrf.mxu1 }
 0x696   : > { %v2093_v12 = vpop.eup %2092 }
 0x697   : > { %v835_v13 = vadd.f32 1.0, %v2093_v12 }
 0x699   : > { %2094 = vrcp.f32 %v835_v13 }
 0x6a6   : > { %v2095_v15 = vpop.eup %2094 }
 0x6a7   : > { %v838_v16 = vmul.f32 2.0, %v2095_v15  ;;  %v840_v20 = vmul.f32 %v2095_v15, %v749_v61 }
 0x6a9   : > { %v1838_v17 = vadd.f32 -1.0, %v838_v16 }
 0x6ab   : > { %842 = vrot.lane.b32.xlu0 %v1838_v17, %s2177_s26 }
 0x71d   : > { %v843_v18 = vpop.permute.xlu0 %842 }
 0x71e   : > { %v845_v19 = vmul.f32 %v2095_v15, %v843_v18 }
 0x720   : > { %847 = vrot.lane.b32.xlu1 %v845_v19, %s2177_s26 }
 0x792   : > { %v848_v21 = vpop.permute.xlu1 %847 }
 0x793   : > { %v850_v22 = vadd.f32 %v848_v21, %v840_v20  ;;  %v549_v20 = vadd.f32 %v2326_v23, %v2389_v34 }
 0x795   : > { %2096 = vtanh.f32 %v850_v22 }
 0x7a2   : > { %v2097_v26 = vpop.eup %2096 }
 0x7a3   : > { %853 = vrot.lane.b32.xlu0 %v2097_v26, %s2177_s26 }
 0x815   : > { %v854_v27 = vpop.permute.xlu0 %853 }
 0x816   : > { %v2373_v28 = vmul.f32 %v2095_v15, %v854_v27 }
 0x818   : > { %v885_v29 = vpack.c.bf16 %v2373_v28, %v2373_v28 }
 0x81a   : > { %887 = vrot.lane.b32.xlu1 %v885_v29, %s2178_s27 }
 0x88c   : > { %v888_v30 = vpop.permute.xlu1 %887 }
 0x88d   : > { %1973 = vmatmul.mubr.msk.bf16.vlgmr.msra.gmra.mxu0 %vm585_vm2, %v888_v30 }
 0x88e   : > { %1985 = vmatpush3.bf16.msra.mxu0 %v2275_v11  ;;  %1988 = vmatprep.mubr.msk.bf16.mxu0 %vm2175_vm0, %v2174_v10 }
 0x88f   : > { %1986 = vmatprep.subr.bf16.mxu0 %v2174_v10 }
 0x892   : > { %1987 = vmatpush3.bf16.msra.mxu0 %v2288_v14 }
 0x893   : > { %2000 = vmatprep.subr.bf16.mxu0 %v2174_v10 }
 0x94d   : > { %v926_v36 = vpop.f32.mrf.mxu0 }
 0x94e   : > { %v932_v37 = vadd.f32 %v926_v36, %v541_v35 }
 0x94f   : > { %v1974_v38 = vpop.f32.mrf.mxu0 }
 0x950   : > { %v1842_v39 = vmul.f32 -1.442695, %v932_v37 }
 0x951   : > { %v929_v41 = vpop.f32.mrf.mxu0 }
 0x952   : > { %2098 = vpow2.f32 %v1842_v39 }
 0x953   : > { %v1975_v42 = vpop.f32.mrf.mxu0 }
 0x95f   : > { %v2099_v44 = vpop.eup %2098 }
 0x960   : > { %v936_v45 = vadd.f32 1.0, %v2099_v44 }
 0x962   : > { %2100 = vrcp.f32 %v936_v45 }
 0x96f   : > { %v2101_v46 = vpop.eup %2100 }
 0x970   : > { %v939_v47 = vmul.f32 2.0, %v2101_v46  ;;  %v941_v43 = vmul.f32 %v2101_v46, %v850_v22 }
 0x972   : > { %v1843_v48 = vadd.f32 -1.0, %v939_v47 }
 0x974   : > { %943 = vrot.lane.b32.xlu0 %v1843_v48, %s2177_s26 }
 0x9e6   : > { %v944_v49 = vpop.permute.xlu0 %943 }
 0x9e7   : > { %v946_v50 = vmul.f32 %v2101_v46, %v944_v49 }
 0x9e9   : > { %948 = vrot.lane.b32.xlu1 %v946_v50, %s2177_s26 }
 0xa5b   : > { %v949_v51 = vpop.permute.xlu1 %948 }
 0xa5c   : > { %v951_v52 = vadd.f32 %v949_v51, %v941_v43 }
 0xa5e   : > { %2102 = vtanh.f32 %v951_v52 }
 0xa6b   : > { %v2103_v53 = vpop.eup %2102 }
 0xa6c   : > { %954 = vrot.lane.b32.xlu0 %v2103_v53, %s2177_s26 }
 0xade   : > { %v955_v54 = vpop.permute.xlu0 %954 }
 0xadf   : > { %v2396_v55 = vmul.f32 %v2101_v46, %v955_v54  ;;  %v554_v46 = vadd.f32 %v2385_v31, %v2326_v23 }
 0xae1   : > { %v986_v56 = vpack.c.bf16 %v2396_v55, %v2396_v55 }
 0xae3   : > { %988 = vrot.lane.b32.xlu1 %v986_v56, %s2178_s27 }
 0xb55   : > { %v989_v57 = vpop.permute.xlu1 %988 }
 0xb56   : > { %1981 = vmatmul.mubr.msk.bf16.vlgmr.msra.gmra.mxu1 %vm585_vm2, %v989_v57 }
 0xb57   : > { %1993 = vmatpush3.bf16.msra.mxu1 %v2275_v11  ;;  %1996 = vmatprep.mubr.msk.bf16.mxu1 %vm2175_vm0, %v2174_v10 }
 0xb58   : > { %1994 = vmatprep.subr.bf16.mxu1 %v2174_v10 }
 0xb5b   : > { %1995 = vmatpush3.bf16.msra.mxu1 %v2288_v14 }
 0xc16   : > { %v1027_v59 = vpop.f32.mrf.mxu1 }
 0xc17   : > { %v1033_v60 = vadd.f32 %v1027_v59, %v546_v58 }
 0xc18   : > { %v1982_v61 = vpop.f32.mrf.mxu1 }
 0xc19   : > { %v1847_v62 = vmul.f32 -1.442695, %v1033_v60 }
 0xc1a   : > { %v1030_v63 = vpop.f32.mrf.mxu1 }
 0xc1b   : > { %2104 = vpow2.f32 %v1847_v62 }
 0xc1c   : > { %v1983_v1 = vpop.f32.mrf.mxu1 }
 0xc28   : > { %v2105_v2 = vpop.eup %2104 }
 0xc29   : > { %v1037_v3 = vadd.f32 1.0, %v2105_v2 }
 0xc2b   : > { %2106 = vrcp.f32 %v1037_v3 }
 0xc38   : > { %v2107_v4 = vpop.eup %2106 }
 0xc39   : > { %v1040_v5 = vmul.f32 2.0, %v2107_v4  ;;  %v1042_v9 = vmul.f32 %v2107_v4, %v951_v52 }
 0xc3b   : > { %v1848_v6 = vadd.f32 -1.0, %v1040_v5 }
 0xc3d   : > { %1044 = vrot.lane.b32.xlu0 %v1848_v6, %s2177_s26 }
 0xcaf   : > { %v1045_v7 = vpop.permute.xlu0 %1044 }
 0xcb0   : > { %v1047_v8 = vmul.f32 %v2107_v4, %v1045_v7 }
 0xcb2   : > { %1049 = vrot.lane.b32.xlu1 %v1047_v8, %s2177_s26 }
 0xd24   : > { %v1050_v12 = vpop.permute.xlu1 %1049 }
 0xd25   : > { %v1052_v13 = vadd.f32 %v1050_v12, %v1042_v9 }
 0xd27   : > { %2108 = vtanh.f32 %v1052_v13 }
 0xd34   : > { %v2109_v15 = vpop.eup %2108 }
 0xd35   : > { %1055 = vrot.lane.b32.xlu0 %v2109_v15, %s2177_s26 }
 0xda7   : > { %v1056_v16 = vpop.permute.xlu0 %1055 }
 0xda8   : > { %v2411_v17 = vmul.f32 %v2107_v4, %v1056_v16  ;;  %v557_v4 = vadd.f32 %v2387_v33, %v2326_v23  ;;  %v2461_v33 = vld [vmem:[%s2458_s14 + $0x38] sm:$0xff] }
 0xdaa   : > { %v1083_v18 = vpack.c.bf16 %v2411_v17, %v2411_v17 }
 0xdac   : > { %1085 = vrot.lane.b32.xlu1 %v1083_v18, %s2178_s27 }
 0xe1e   : > { %v1086_v19 = vpop.permute.xlu1 %1085 }
 0xe1f   : > { %1989 = vmatmul.mubr.msk.bf16.vlgmr.msra.gmra.mxu0 %vm585_vm2, %v1086_v19 }
 0xe20   : > { %2001 = vmatpush3.bf16.msra.mxu0 %v2275_v11  ;;  %2004 = vmatprep.mubr.msk.bf16.mxu0 %vm2175_vm0, %v2174_v10 }
 0xe21   : > { %2002 = vmatprep.subr.bf16.mxu0 %v2174_v10 }
 0xe24   : > { %2003 = vmatpush3.bf16.msra.mxu0 %v2288_v14 }
 0xe25   : > { %2028 = vmatprep.subr.mxu0 %v2174_v10 }
 0xedf   : > { %v1124_v21 = vpop.f32.mrf.mxu0 }
 0xee0   : > { %v1130_v22 = vadd.f32 %v1124_v21, %v549_v20  ;;  %v1834_v21 = vld [vmem:[%s2458_s14 + $0x8] sm:$0xff] }
 0xee1   : > { %v1990_v24 = vpop.f32.mrf.mxu0 }
 0xee2   : > { %v1852_v25 = vmul.f32 -1.442695, %v1130_v22  ;;  %v1839_v22 = vld [vmem:[%s2458_s14 + $0x10] sm:$0xff]  ;;  %v1844_v24 = vld [vmem:[%s2458_s14 + $0x18] sm:$0xff] }
 0xee3   : > { %v1127_v26 = vpop.f32.mrf.mxu0 }
 0xee4   : > { %2110 = vpow2.f32 %v1852_v25  ;;  %v1364_v25 = vld [vmem:[%s2458_s14] sm:$0xff] }
 0xee5   : > { %v1991_v27 = vpop.f32.mrf.mxu0 }
 0xef1   : > { %v2111_v11 = vpop.eup %2110 }
 0xef2   : > { %v1134_v29 = vadd.f32 1.0, %v2111_v11 }
 0xef4   : > { %2112 = vrcp.f32 %v1134_v29 }
 0xf01   : > { %v2113_v30 = vpop.eup %2112 }
 0xf02   : > { %v1137_v32 = vmul.f32 2.0, %v2113_v30  ;;  %v1139_v34 = vmul.f32 %v2113_v30, %v1052_v13 }
 0xf04   : > { %v1853_v35 = vadd.f32 -1.0, %v1137_v32 }
 0xf06   : > { %1141 = vrot.lane.b32.xlu0 %v1853_v35, %s2177_s26 }
 0xf78   : > { %v1142_v14 = vpop.permute.xlu0 %1141 }
 0xf79   : > { %v1144_v36 = vmul.f32 %v2113_v30, %v1142_v14  ;;  %v1835_v14 = vld [vmem:[%s2458_s14 + $0x30] sm:$0xff] }
 0xf7b   : > { %1146 = vrot.lane.b32.xlu1 %v1144_v36, %s2177_s26 }
 0xfed   : > { %v1147_v37 = vpop.permute.xlu1 %1146 }
 0xfee   : > { %v1149_v38 = vadd.f32 %v1147_v37, %v1139_v34  ;;  %v1840_v34 = vld [vmem:[%s2458_s14 + $0x28] sm:$0xff] }
 0xff0   : > { %2114 = vtanh.f32 %v1149_v38 }
 0xffd   : > { %v2115_v39 = vpop.eup %2114 }
 0xffe   : > { %1152 = vrot.lane.b32.xlu0 %v2115_v39, %s2177_s26  ;;  %v1845_v39 = vld [vmem:[%s2458_s14 + $0x20] sm:$0xff] }
0x1070   : > { %v1153_v41 = vpop.permute.xlu0 %1152 }
0x1071   : > { %v2428_v42 = vmul.f32 %v2113_v30, %v1153_v41 }
0x1073   : > { %v1180_v44 = vpack.c.bf16 %v2428_v42, %v2428_v42 }
0x1075   : > { %1182 = vrot.lane.b32.xlu1 %v1180_v44, %s2178_s27 }
0x10e7   : > { %v1183_v45 = vpop.permute.xlu1 %1182 }
0x10e8   : > { %1997 = vmatmul.mubr.msk.bf16.vlgmr.msra.gmra.mxu1 %vm585_vm2, %v1183_v45 }
0x11a8   : > { %v1221_v47 = vpop.f32.mrf.mxu1 }
0x11a9   : > { %v1227_v48 = vadd.f32 %v1221_v47, %v554_v46  ;;  %v1392_v46 = vld [vmem:[%s2606_s5 + $0x18] sm:$0xff]  ;;  %v1391_v47 = vld [vmem:[%s2606_s5 + $0x10] sm:$0xff] }
0x11aa   : > { %v1998_v49 = vpop.f32.mrf.mxu1  ;;  %2008 = vmatprep.subr.mxu1 %v1392_v46 }
0x11ab   : > { %v1857_v50 = vmul.f32 -1.442695, %v1227_v48  ;;  %2009 = vmatpush3.msra.mxu1 %v1392_v46  ;;  %v1390_v48 = vld [vmem:[%s2606_s5 + $0x8] sm:$0xff]  ;;  %v1389_v49 = vld [vmem:[%s2606_s5] sm:$0xff] }
0x11ac   : > { %v1224_v43 = vpop.f32.mrf.mxu1  ;;  %2010 = vmatprep.subr.mxu1 %v1391_v47 }
0x11ad   : > { %2116 = vpow2.f32 %v1857_v50  ;;  %2011 = vmatpush3.msra.mxu1 %v1391_v47 }
0x11ae   : > { %v1999_v51 = vpop.f32.mrf.mxu1  ;;  %2012 = vmatprep.subr.mxu1 %v1390_v48 }
0x11af   : > { %2013 = vmatpush3.msra.mxu1 %v1390_v48 }
0x11b0   : > { %2014 = vmatprep.subr.mxu1 %v1389_v49 }
0x11b1   : > { %2015 = vmatpush3.msra.mxu1 %v1389_v49 }
0x11ba   : > { %v2117_v52 = vpop.eup %2116 }
0x11bb   : > { %v1231_v53 = vadd.f32 1.0, %v2117_v52 }
0x11bd   : > { %2118 = vrcp.f32 %v1231_v53 }
0x11ca   : > { %v2119_v54 = vpop.eup %2118 }
0x11cb   : > { %v1234_v56 = vmul.f32 2.0, %v2119_v54  ;;  %v1236_v31 = vmul.f32 %v2119_v54, %v1149_v38 }
0x11cd   : > { %v1858_v57 = vadd.f32 -1.0, %v1234_v56 }
0x11cf   : > { %1238 = vrot.lane.b32.xlu0 %v1858_v57, %s2177_s26 }
0x1241   : > { %v1239_v58 = vpop.permute.xlu0 %1238 }
0x1242   : > { %v1241_v59 = vmul.f32 %v2119_v54, %v1239_v58 }
0x1244   : > { %1243 = vrot.lane.b32.xlu1 %v1241_v59, %s2177_s26 }
0x12b6   : > { %v1244_v60 = vpop.permute.xlu1 %1243 }
0x12b7   : > { %v1246_v61 = vadd.f32 %v1244_v60, %v1236_v31 }
0x12b9   : > { %2120 = vtanh.f32 %v1246_v61 }
0x12c6   : > { %v2121_v62 = vpop.eup %2120 }
0x12c7   : > { %1249 = vrot.lane.b32.xlu0 %v2121_v62, %s2177_s26 }
0x1339   : > { %v1250_v63 = vpop.permute.xlu0 %1249 }
0x133a   : > { %v2439_v1 = vmul.f32 %v2119_v54, %v1250_v63 }
0x133c   : > { %v1277_v2 = vpack.c.bf16 %v2439_v1, %v2439_v1 }
0x133e   : > { %1279 = vrot.lane.b32.xlu1 %v1277_v2, %s2178_s27 }
0x13b0   : > { %v1280_v3 = vpop.permute.xlu1 %1279 }
0x13b1   : > { %2005 = vmatmul.mubr.msk.bf16.vlgmr.msra.gmra.mxu0 %vm585_vm2, %v1280_v3 }
0x13b2   : > { %2036 = vmatprep.mubr.msk.f32.mxu0 %vm2175_vm0, %v2174_v10 }
0x1471   : > { %v1318_v5 = vpop.f32.mrf.mxu0 }
0x1472   : > { %v1324_v6 = vadd.f32 %v1318_v5, %v557_v4 }
0x1473   : > { %v2006_v7 = vpop.f32.mrf.mxu0 }
0x1474   : > { %v1862_v8 = vmul.f32 -1.442695, %v1324_v6 }
0x1475   : > { %v1321_v9 = vpop.f32.mrf.mxu0 }
0x1476   : > { %2122 = vpow2.f32 %v1862_v8 }
0x1477   : > { %v2007_v12 = vpop.f32.mrf.mxu0 }
0x1483   : > { %v2123_v13 = vpop.eup %2122 }
0x1484   : > { %v1328_v15 = vadd.f32 1.0, %v2123_v13 }
0x1486   : > { %2124 = vrcp.f32 %v1328_v15 }
0x1493   : > { %v2449_v16 = vpop.eup %2124 }
0x1494   : > { %v1331_v18 = vmul.f32 2.0, %v2449_v16  ;;  %v1333_v26 = vmul.f32 %v2449_v16, %v1246_v61 }
0x1496   : > { %v1863_v19 = vadd.f32 -1.0, %v1331_v18 }
0x1498   : > { %1335 = vrot.lane.b32.xlu0 %v1863_v19, %s2177_s26 }
0x150a   : > { %v1336_v20 = vpop.permute.xlu0 %1335 }
0x150b   : > { %v1338_v23 = vmul.f32 %v2449_v16, %v1336_v20 }
0x150d   : > { %1340 = vrot.lane.b32.xlu1 %v1338_v23, %s2177_s26 }
0x1511   : > { %656 = vrot.lane.b32.xlu1 %v2332_v40, %s2178_s27 }
0x1515   : > { %676 = vperm.xlu1 %2069, %v2461_v33  }
0x1519   : > { %768 = vperm.xlu1 %2069, %v1834_v21  }
0x151d   : > { %757 = vrot.lane.b32.xlu1 %v2350_v0, %s2178_s27 }
0x1521   : > { %869 = vperm.xlu1 %2069, %v1839_v22  }
0x1525   : > { %1254 = vrot.lane.b32.xlu1 %v2439_v1, %s2178_s27 }
0x1529   : > { %970 = vperm.xlu1 %2069, %v1844_v24  }
0x152d   : > { %959 = vrot.lane.b32.xlu1 %v2396_v55, %s2178_s27 }
0x1531   : > { %1060 = vrot.lane.b32.xlu1 %v2411_v17, %s2178_s27 }
0x1535   : > { %1076 = vperm.xlu1 %2069, %v1844_v24  }
0x1539   : > { %1173 = vperm.xlu1 %2069, %v1839_v22  }
0x153d   : > { %1270 = vperm.xlu1 %2069, %v1834_v21  }
0x1541   : > { %1367 = vperm.xlu1 %2069, %v1364_v25  }
0x157f   : > { %v1341_v27 = vpop.permute.xlu1 %1340 }
0x1580   : > { %v1343_v11 = vadd.f32 %v1341_v27, %v1333_v26 }
0x1582   : > { %2126 = vtanh.f32 %v1343_v11 }
0x1583   : > { %v657_v29 = vpop.permute.xlu1 %656 }
0x1584   : > { %660 = vst.msk [vmem:[#allocation3] sm:$0xff] %vm659_vm3, %v657_v29 }
0x1585   : > { %663 = vst.msk [vmem:[#allocation3 + $0x38] sm:$0xff] %vm662_vm4, %v657_v29 }
0x158f   : > { %v2127_v30 = vpop.eup %2126 }
0x1590   : > { %1346 = vrot.lane.b32.xlu0 %v2127_v30, %s2177_s26  ;;  %v677_v32 = vpop.permute.xlu1 %676 }
0x1591   : > { %v679_v3 = vmul.f32 %v677_v32, %v2332_v40 }
0x1594   : > { %v769_v35 = vpop.permute.xlu1 %768  ;;  %667 = vperm.xlu0 %2068, %v1364_v25  }
0x1595   : > { %v771_v52 = vmul.f32 %v769_v35, %v2350_v0 }
0x1598   : > { %v758_v36 = vpop.permute.xlu1 %757  ;;  %777 = vperm.xlu0 %2068, %v1835_v14  }
0x1599   : > { %761 = vst.msk [vmem:[#allocation3 + $0x8] sm:$0xff] %vm659_vm3, %v758_v36 }
0x159a   : > { %763 = vst.msk [vmem:[#allocation3 + $0x30] sm:$0xff] %vm662_vm4, %v758_v36 }
0x159c   : > { %v870_v37 = vpop.permute.xlu1 %869  ;;  %878 = vperm.xlu0 %2068, %v1840_v34  }
0x159d   : > { %v872_v54 = vmul.f32 %v870_v37, %v2373_v28 }
0x15a0   : > { %v1255_v38 = vpop.permute.xlu1 %1254  ;;  %858 = vrot.lane.b32.xlu0 %v2373_v28, %s2178_s27 }
0x15a1   : > { %1257 = vst.msk [vmem:[#allocation3 + $0x30] sm:$0xff] %vm659_vm3, %v1255_v38 }
0x15a2   : > { %1258 = vst.msk [vmem:[#allocation3 + $0x8] sm:$0xff] %vm662_vm4, %v1255_v38 }
0x15a4   : > { %v971_v41 = vpop.permute.xlu1 %970  ;;  %979 = vperm.xlu0 %2068, %v1845_v39  }
0x15a5   : > { %v973_v58 = vmul.f32 %v971_v41, %v2396_v55 }
0x15a8   : > { %v960_v44 = vpop.permute.xlu1 %959  ;;  %1157 = vrot.lane.b32.xlu0 %v2428_v42, %s2178_s27  ;;  %v1387_v36 = vld [vmem:[#allocation3 + $0x30] sm:$0xff] }
0x15a9   : > { %963 = vst.msk [vmem:[#allocation3 + $0x18] sm:$0xff] %vm659_vm3, %v960_v44  ;;  %v1382_v22 = vld [vmem:[#allocation3 + $0x8] sm:$0xff] }
0x15aa   : > { %965 = vst.msk [vmem:[#allocation3 + $0x20] sm:$0xff] %vm662_vm4, %v960_v44 }
0x15ac   : > { %v1061_v45 = vpop.permute.xlu1 %1060  ;;  %1068 = vperm.xlu0 %2068, %v1845_v39  }
0x15ad   : > { %1063 = vst.msk [vmem:[#allocation3 + $0x20] sm:$0xff] %vm659_vm3, %v1061_v45 }
0x15ae   : > { %1064 = vst.msk [vmem:[#allocation3 + $0x18] sm:$0xff] %vm662_vm4, %v1061_v45 }
0x15b0   : > { %v1077_v31 = vpop.permute.xlu1 %1076 }
0x15b1   : > { %v1079_v12 = vmul.f32 %v1077_v31, %v2411_v17 }
0x15b4   : > { %v1174_v63 = vpop.permute.xlu1 %1173  ;;  %v1385_v11 = vld [vmem:[#allocation3 + $0x20] sm:$0xff] }
0x15b5   : > { %v1176_v15 = vmul.f32 %v1174_v63, %v2428_v42  ;;  %v1384_v26 = vld [vmem:[#allocation3 + $0x18] sm:$0xff]  ;;  %v1633_v63 = vld [vmem:[%s2608_s7] sm:$0xff] }
0x15b8   : > { %v1271_v9 = vpop.permute.xlu1 %1270 }
0x1602   : > { %v1347_v50 = vpop.permute.xlu0 %1346 }
0x1603   : > { %v2508_v43 = vmul.f32 %v2449_v16, %v1347_v50 }
0x1605   : > { %1351 = vrot.lane.b32.xlu0 %v2508_v43, %s2178_s27 }
0x1609   : > { %1165 = vperm.xlu0 %2068, %v1840_v34  }
0x160d   : > { %1262 = vperm.xlu0 %2068, %v1835_v14  }
0x160f   : > { %v668_v51 = vpop.permute.xlu0 %667 }
0x1610   : > { %v670_v53 = vmul.f32 %v668_v51, %v2332_v40  ;;  %v1368_v40 = vpop.permute.xlu1 %1367 }
0x1611   : > { %1359 = vperm.xlu0 %2068, %v2461_v33   ;;  %v1370_v19 = vmul.f32 %v1368_v40, %v2508_v43 }
0x1612   : > { %v772_v56 = vadd.f32 %v771_v52, %v670_v53 }
0x1613   : > { %v778_v57 = vpop.permute.xlu0 %777 }
0x1614   : > { %v873_v59 = vadd.f32 %v872_v54, %v772_v56  ;;  %v780_v62 = vmul.f32 %v778_v57, %v2350_v0 }
0x1616   : > { %v974_v60 = vadd.f32 %v973_v58, %v873_v59  ;;  %v781_v5 = vadd.f32 %v780_v62, %v679_v3  ;;  %v1634_v62 = vld [vmem:[%s2608_s7 + $0x8] sm:$0xff] }
0x1617   : > { %v879_v61 = vpop.permute.xlu0 %878 }
0x1618   : > { %v881_v4 = vmul.f32 %v879_v61, %v2373_v28  ;;  %v1273_v28 = vmul.f32 %v1271_v9, %v2439_v1  ;;  %v1635_v61 = vld [vmem:[%s2608_s7 + $0x10] sm:$0xff] }
0x161a   : > { %v882_v7 = vadd.f32 %v881_v4, %v781_v5 }
0x161b   : > { %v859_v2 = vpop.permute.xlu0 %858 }
0x161c   : > { %862 = vst.msk [vmem:[#allocation3 + $0x10] sm:$0xff] %vm659_vm3, %v859_v2 }
0x161d   : > { %864 = vst.msk [vmem:[#allocation3 + $0x28] sm:$0xff] %vm662_vm4, %v859_v2 }
0x161f   : > { %v980_v6 = vpop.permute.xlu0 %979 }
0x1620   : > { %v982_v8 = vmul.f32 %v980_v6, %v2396_v55 }
0x1622   : > { %v983_v13 = vadd.f32 %v982_v8, %v882_v7 }
0x1623   : > { %v1158_v0 = vpop.permute.xlu0 %1157 }
0x1624   : > { %v1080_v16 = vadd.f32 %v1079_v12, %v983_v13  ;;  %1160 = vst.msk [vmem:[#allocation3 + $0x28] sm:$0xff] %vm659_vm3, %v1158_v0 }
0x1625   : > { %1161 = vst.msk [vmem:[#allocation3 + $0x10] sm:$0xff] %vm662_vm4, %v1158_v0 }
0x1626   : > { %v1177_v18 = vadd.f32 %v1176_v15, %v1080_v16 }
0x1627   : > { %v1069_v23 = vpop.permute.xlu0 %1068 }
0x1628   : > { %v1274_v20 = vadd.f32 %v1273_v28, %v1177_v18  ;;  %v1071_v27 = vmul.f32 %v1069_v23, %v2411_v17 }
0x162a   : > { %v1371_v55 = vadd.f32 %v1370_v19, %v1274_v20  ;;  %v1072_v35 = vadd.f32 %v1071_v27, %v974_v60  ;;  %v1636_v60 = vld [vmem:[%s2608_s7 + $0x18] sm:$0xff] }
0x162b   : > { %v1386_v32 = vld [vmem:[#allocation3 + $0x28] sm:$0xff]  ;;  %2029 = vmatpush3.msra.mxu0 %v1636_v60 }
0x162c   : > { %1377 = vrot.lane.b32.xlu1 %v1371_v55, %s2178_s27  ;;  %v1383_v24 = vld [vmem:[#allocation3 + $0x10] sm:$0xff]  ;;  %2030 = vmatprep.subr.mxu0 %v2174_v10 }
0x162d   : > { %2031 = vmatpush3.msra.mxu0 %v1635_v61 }
0x162e   : > { %2032 = vmatprep.subr.mxu0 %v2174_v10 }
0x162f   : > { %2033 = vmatpush3.msra.mxu0 %v1634_v62 }
0x1630   : > { %2034 = vmatprep.subr.mxu0 %v2174_v10 }
0x1631   : > { %2035 = vmatpush3.msra.mxu0 %v1633_v63 }
0x1677   : > { %v1352_v33 = vpop.permute.xlu0 %1351 }
0x1678   : > { %1354 = vst.msk [vmem:[#allocation3 + $0x38] sm:$0xff] %vm659_vm3, %v1352_v33 }
0x1679   : > { %1355 = vst.msk [vmem:[#allocation3] sm:$0xff] %vm662_vm4, %v1352_v33 }
0x167f   : > { %v1388_v17 = vld [vmem:[#allocation3 + $0x38] sm:$0xff] }
0x1680   : > { %v1381_v21 = vld [vmem:[#allocation3] sm:$0xff] }
0x1681   : > { %2016 = vmatprep.mubr.msk.f32.mxu1 %vm585_vm2, %v1381_v21 }
0x1682   : > { %2017 = vmatmul.mubr.msk.f32.vlgmr.msra.gmra.mxu1 %vm585_vm2, %v1382_v22 }
0x1683   : > { %2019 = vmatprep.mubr.msk.f32.mxu1 %vm585_vm2, %v1383_v24 }
0x1684   : > { %v1166_v25 = vpop.permute.xlu0 %1165 }
0x1685   : > { %v1168_v29 = vmul.f32 %v1166_v25, %v2428_v42 }
0x1686   : > { %2020 = vmatmul.mubr.msk.f32.gmra.mxu1 %vm585_vm2, %v1384_v26 }
0x1687   : > { %2022 = vmatprep.mubr.msk.f32.mxu1 %vm585_vm2, %v1385_v11  ;;  %v1169_v34 = vadd.f32 %v1168_v29, %v1072_v35 }
0x1688   : > { %v1263_v30 = vpop.permute.xlu0 %1262 }
0x1689   : > { %v1265_v14 = vmul.f32 %v1263_v30, %v2439_v1 }
0x168a   : > { %2023 = vmatmul.mubr.msk.f32.gmra.mxu1 %vm585_vm2, %v1386_v32 }
0x168b   : > { %2025 = vmatprep.mubr.msk.f32.mxu1 %vm585_vm2, %v1387_v36  ;;  %v1266_v38 = vadd.f32 %v1265_v14, %v1169_v34 }
0x168c   : > { %v1360_v37 = vpop.permute.xlu0 %1359 }
0x168d   : > { %v1362_v39 = vmul.f32 %v1360_v37, %v2508_v43 }
0x168e   : > { %2026 = vmatmul.mubr.msk.f32.gmra.mxu1 %vm585_vm2, %v1388_v17 }
0x168f   : > { %v1363_v41 = vadd.f32 %v1362_v39, %v1266_v38 }
0x1691   : > { %1373 = vrot.lane.b32.xlu0 %v1363_v41, %s2178_s27 }
0x169e   : > { %v1378_v42 = vpop.permute.xlu1 %1377 }
0x1703   : > { %v1374_v44 = vpop.permute.xlu0 %1373 }
0x1704   : > { %v1380_v1 = vsel %vm659_vm3, %v1374_v44, %v1378_v42 }
0x1705   : > { %v1524_v45 = vmul.f32 %v1383_v24, %v1380_v1  ;;  %v1523_v46 = vmul.f32 %v1382_v22, %v1380_v1  ;;  %v1525_v49 = vmul.f32 %v1384_v26, %v1380_v1  ;;  %v1526_v50 = vmul.f32 %v1385_v11, %v1380_v1 }
0x1706   : > { %v1527_v52 = vmul.f32 %v1386_v32, %v1380_v1  ;;  %v1528_v53 = vmul.f32 %v1387_v36, %v1380_v1  ;;  %v1522_v57 = vmul.f32 %v1381_v21, %v1380_v1  ;;  %v1529_v59 = vmul.f32 %v1388_v17, %v1380_v1 }
0x1707   : > { %v1536_v47 = vsel %vm585_vm2, %v1524_v45, 0.0  ;;  %v1533_v48 = vsel %vm585_vm2, %v1523_v46, 0.0  ;;  %v1539_v43 = vsel %vm585_vm2, %v1525_v49, 0.0  ;;  %v1542_v51 = vsel %vm585_vm2, %v1526_v50, 0.0 }
0x1708   : > { %1537 = vadd.xlane.f32.xlu0 %v1536_v47  ;;  %1534 = vadd.xlane.f32.xlu1 %v1533_v48  ;;  %v1545_v54 = vsel %vm585_vm2, %v1527_v52, 0.0  ;;  %v1548_v56 = vsel %vm585_vm2, %v1528_v53, 0.0  ;;  %v1530_v58 = vsel %vm585_vm2, %v1522_v57, 0.0  ;;  %v1551_v31 = vsel %vm585_vm2, %v1529_v59, 0.0 }
0x170c   : > { %1540 = vadd.xlane.f32.xlu0 %v1539_v43  ;;  %1543 = vadd.xlane.f32.xlu1 %v1542_v51 }
0x1710   : > { %1546 = vadd.xlane.f32.xlu0 %v1545_v54  ;;  %1549 = vadd.xlane.f32.xlu1 %v1548_v56 }
0x1714   : > { %1531 = vadd.xlane.f32.xlu0 %v1530_v58 }
0x1718   : > { %1552 = vadd.xlane.f32.xlu0 %v1551_v31 }
0x1742   : > { %v2018_v1 = vpop.f32.mrf.mxu1 }
0x1744   : > { %v1483_v48 = vpop.f32.mrf.mxu1 }
0x1746   : > { %v2021_v49 = vpop.f32.mrf.mxu1 }
0x1748   : > { %v1493_v50 = vpop.f32.mrf.mxu1 }
0x174a   : > { %v2024_v43 = vpop.f32.mrf.mxu1 }
0x174c   : > { %v1503_v56 = vpop.f32.mrf.mxu1 }
0x1791   : > { %v1538_v2 = vpop.xlane.xlu0 %1537  ;;  %v1535_v3 = vpop.xlane.xlu1 %1534 }
0x1795   : > { %v1541_v4 = vpop.xlane.xlu0 %1540  ;;  %v1544_v5 = vpop.xlane.xlu1 %1543 }
0x1799   : > { %v1547_v6 = vpop.xlane.xlu0 %1546  ;;  %v1550_v8 = vpop.xlane.xlu1 %1549 }
0x179a   : > { %v1555_v13 = vmax.f32 %v1535_v3, %v1547_v6  ;;  %v1556_v0 = vmax.f32 %v1538_v2, %v1550_v8 }
0x179d   : > { %v1532_v7 = vpop.xlane.xlu0 %1531 }
0x179e   : > { %v1554_v9 = vmax.f32 %v1532_v7, %v1544_v5 }
0x17a0   : > { %v1558_v16 = vmax.f32 %v1554_v9, %v1555_v13 }
0x17a1   : > { %v1553_v12 = vpop.xlane.xlu0 %1552 }
0x17a2   : > { %v1557_v15 = vmax.f32 %v1541_v4, %v1553_v12 }
0x17a4   : > { %v1559_v40 = vmax.f32 %v1556_v0, %v1557_v15 }
0x17a6   : > { %v1560_v28 = vmax.f32 %v1558_v16, %v1559_v40 }
0x17a8   : > { %v1561_v18 = vsub.f32 %v1532_v7, %v1560_v28  ;;  %v1562_v19 = vsub.f32 %v1535_v3, %v1560_v28  ;;  %v1563_v20 = vsub.f32 %v1538_v2, %v1560_v28  ;;  %v1564_v10 = vsub.f32 %v1541_v4, %v1560_v28  ;;  %v2027_v3 = vpop.f32.mrf.mxu1 }
0x17a9   : > { %v1565_v33 = vsub.f32 %v1544_v5, %v1560_v28  ;;  %v1566_v22 = vsub.f32 %v1547_v6, %v1560_v28  ;;  %v1567_v25 = vsub.f32 %v1550_v8, %v1560_v28  ;;  %v1568_v27 = vsub.f32 %v1553_v12, %v1560_v28 }
0x17aa   : > { %v1569_v55 = vmul.f32 1.442695, %v1561_v18  ;;  %v1571_v23 = vmul.f32 1.442695, %v1562_v19  ;;  %v1573_v21 = vmul.f32 1.442695, %v1563_v20  ;;  %v1513_v0 = vpop.f32.mrf.mxu1 }
0x17ab   : > { %v1575_v24 = vmul.f32 1.442695, %v1564_v10  ;;  %v1577_v26 = vmul.f32 1.442695, %v1565_v33  ;;  %v1579_v11 = vmul.f32 1.442695, %v1566_v22 }
0x17ac   : > { %2128 = vpow2.f32 %v1569_v55  ;;  %v1581_v29 = vmul.f32 1.442695, %v1567_v25  ;;  %v1583_v30 = vmul.f32 1.442695, %v1568_v27  ;;  %v1873_v33 = vld [vmem:[%s2607_s6] ss:$0 sm:$0xff] }
0x17ad   : > { %2130 = vpow2.f32 %v1571_v23  ;;  %v1874_v25 = vld [vmem:[%s2609_s8] ss:$0 sm:$0xff] }
0x17ae   : > { %2132 = vpow2.f32 %v1573_v21 }
0x17af   : > { %2134 = vpow2.f32 %v1575_v24 }
0x17b0   : > { %2136 = vpow2.f32 %v1577_v26 }
0x17b1   : > { %2138 = vpow2.f32 %v1579_v11 }
0x17b2   : > { %2140 = vpow2.f32 %v1581_v29 }
0x17b3   : > { %2142 = vpow2.f32 %v1583_v30 }
0x17b9   : > { %v2129_v32 = vpop.eup %2128 }
0x17ba   : > { %v2131_v35 = vpop.eup %2130 }
0x17bb   : > { %v1585_v14 = vadd.f32 %v2131_v35, %v2129_v32  ;;  %v2133_v36 = vpop.eup %2132 }
0x17bc   : > { %v2135_v37 = vpop.eup %2134 }
0x17bd   : > { %v1586_v34 = vadd.f32 %v2133_v36, %v1585_v14  ;;  %v2137_v38 = vpop.eup %2136 }
0x17be   : > { %v2139_v41 = vpop.eup %2138 }
0x17bf   : > { %v1587_v17 = vadd.f32 %v2135_v37, %v1586_v34  ;;  %v2141_v44 = vpop.eup %2140 }
0x17c0   : > { %v2143_v46 = vpop.eup %2142 }
0x17c1   : > { %v1588_v39 = vadd.f32 %v2137_v38, %v1587_v17 }
0x17c3   : > { %v1589_v42 = vadd.f32 %v2139_v41, %v1588_v39 }
0x17c5   : > { %v1590_v45 = vadd.f32 %v2141_v44, %v1589_v42 }
0x17c7   : > { %v1591_v47 = vadd.f32 %v2143_v46, %v1590_v45 }
0x17c9   : > { %2144 = vrcp.f32 %v1591_v47 }
0x17d6   : > { %v2145_v51 = vpop.eup %2144 }
0x17d7   : > { %v1593_v52 = vmul.f32 %v2145_v51, %v2129_v32  ;;  %v1594_v53 = vmul.f32 %v2145_v51, %v2131_v35  ;;  %v1595_v54 = vmul.f32 %v2145_v51, %v2133_v36  ;;  %v1596_v57 = vmul.f32 %v2145_v51, %v2135_v37 }
0x17d8   : > { %v1597_v58 = vmul.f32 %v2145_v51, %v2137_v38  ;;  %v1598_v61 = vmul.f32 %v2145_v51, %v2139_v41  ;;  %v1599_v5 = vmul.f32 %v2145_v51, %v2141_v44  ;;  %v1600_v9 = vmul.f32 %v2145_v51, %v2143_v46 }
0x17d9   : > { %v1601_v59 = vmul.f32 %v1593_v52, %v1483_v48  ;;  %v1602_v31 = vmul.f32 %v2018_v1, %v1594_v53  ;;  %v1603_v60 = vmul.f32 %v1595_v54, %v1493_v50  ;;  %v1604_v62 = vmul.f32 %v2021_v49, %v1596_v57 }
0x17da   : > { %v1605_v6 = vmul.f32 %v1597_v58, %v1503_v56  ;;  %v1606_v12 = vmul.f32 %v2024_v43, %v1598_v61  ;;  %v1607_v16 = vmul.f32 %v1599_v5, %v1513_v0  ;;  %v1608_v18 = vmul.f32 %v2027_v3, %v1600_v9 }
0x17db   : > { %v1609_v63 = vsel %vm585_vm2, %v1601_v59, 0.0  ;;  %v1610_v2 = vsel %vm585_vm2, %v1602_v31, 0.0  ;;  %v1612_v7 = vsel %vm585_vm2, %v1603_v60, 0.0  ;;  %v1614_v13 = vsel %vm585_vm2, %v1604_v62, 0.0 }
0x17dc   : > { %v1611_v4 = vadd.f32 %v1610_v2, %v1609_v63  ;;  %v1616_v40 = vsel %vm585_vm2, %v1605_v6, 0.0  ;;  %v1618_v19 = vsel %vm585_vm2, %v1606_v12, 0.0  ;;  %v1620_v10 = vsel %vm585_vm2, %v1607_v16, 0.0 }
0x17dd   : > { %v1622_v23 = vsel %vm585_vm2, %v1608_v18, 0.0 }
0x17de   : > { %v1613_v8 = vadd.f32 %v1612_v7, %v1611_v4 }
0x17e0   : > { %v1615_v15 = vadd.f32 %v1614_v13, %v1613_v8 }
0x17e2   : > { %v1617_v28 = vadd.f32 %v1616_v40, %v1615_v15 }
0x17e4   : > { %v1619_v20 = vadd.f32 %v1618_v19, %v1617_v28 }
0x17e6   : > { %v1621_v55 = vadd.f32 %v1620_v10, %v1619_v20 }
0x17e8   : > { %v1623_v21 = vadd.f32 %v1622_v23, %v1621_v55 }
0x17ea   : > { %v1631_v22 = vadd.f32 %v1873_v33, %v1623_v21 }
0x17ec   : > { %v1632_v24 = vmax.f32 %v1631_v22, 0.0 }
0x17ee   : > { %2037 = vmatmul.mubr.msk.f32.vlgmr.msra.gmra.mxu0 %vm585_vm2, %v1632_v24 }
0x18ae   : > { %v1713_v26 = vpop.f32.mrf.mxu0 }
0x18af   : > { %v1714_v27 = vadd.f32 %v1874_v25, %v1713_v26 }
0x18b0   : > { %v2038_v11 = vpop.f32.mrf.mxu0 }
0x18b1   : > { %v1718_v29 = vsel %vm1717_vm5, %v1714_v27, -inf }
0x18b2   : > { %1719 = vmax.xlane.f32.xlu1 %v1718_v29 }
0x193b   : > { %v1720_v30 = vpop.xlane.xlu1 %1719 }
0x193c   : > { %v1721_v32 = vsub.f32 %v1714_v27, %v1720_v30 }
0x193e   : > { %v1722_v35 = vmul.f32 1.442695, %v1721_v32 }
0x1940   : > { %2146 = vpow2.f32 %v1722_v35 }
0x194d   : > { %v2147_v14 = vpop.eup %2146 }
0x194e   : > { %v1724_v36 = vsel %vm1717_vm5, %v2147_v14, 0.0 }
0x194f   : > { %1725 = vadd.xlane.f32.xlu0 %v1724_v36 }
0x19d8   : > { %v1726_v34 = vpop.xlane.xlu0 %1725 }
0x19d9   : > { %2148 = vlog2.f32 %v1726_v34 }
0x19e6   : > { %v2149_v37 = vpop.eup %2148 }
0x19e7   : > { %v1728_v17 = vmul.f32 0.6931472, %v2149_v37 }
0x19e9   : > { %v1729_v38 = vsub.f32 %v1721_v32, %v1728_v17 }
0x19eb   : > { %1730 = vst.msk [vmem:[%s413_s21] sm:$0xff] %vm1717_vm5, %v1729_v38 }
0x19ec PF: > { %p16_p9 = scmp.ge.s32.totalorder %s2246_s13, 4   ;;  %s2611_s30 = smov %s2168_s10 }
0x19ed   : > { %s2612_s10 = smov %s2255_s16  ;;  %s2613_s11 = smov %s2246_s13 }
0x19ee   :  { %18 = sbr.rel (!%p16_p9) target bundleno = 2 (0x2), region = 153 }

</bundles_post_ra>
